<compile_context>
chip_gen: v5e
topology: v5e:2x2
jax: 0.10.0
libtpu: 0.0.40
codegen_flags: <defaults>
</compile_context>

<pallas_src>
import functools

import jax
import jax.numpy as jnp
from jax.experimental import pallas as pl
from jax.experimental.pallas import tpu as pltpu


def _fem_kernel(x_ref, ws1_ref, w2b_ref, w3b_ref, w3c_ref, bias_ref, o_ref, *,
                H, W, Cin, inter, inter1, dilation):
    HW = H * W
    d = dilation
    S = d * W + d                      # max |flat shift| across the 9 taps

    # Lane-column validity masks for horizontal taps (depend only on w).
    col = jax.lax.broadcasted_iota(jnp.int32, (1, HW), 1) % W
    col_mask = {}
    for kw in (0, 2):
        dw = (kw - 1) * d
        col_mask[dw] = jnp.logical_and(col + dw >= 0, col + dw < W)

    bias_all = bias_ref[...]           # (n_bias, 1) f32

    def im2col(x2d, cin):
        # x2d: (cin, HW) f32 -> (9*cin, HW) slab of shifted/zero-masked taps.
        zpad = jnp.zeros((cin, S), jnp.float32)
        xw = jnp.concatenate([zpad, x2d, zpad], axis=1)      # (cin, HW + 2S)
        taps = []
        for kh in range(3):
            dh = (kh - 1) * d
            for kw in range(3):
                dw = (kw - 1) * d
                s = dh * W + dw                              # static flat shift
                sl = xw[:, S + s:S + s + HW]                 # (cin, HW)
                if dw != 0:
                    sl = jnp.where(col_mask[dw], sl, 0.0)
                taps.append(sl)
        return jnp.concatenate(taps, axis=0)                 # (9*cin, HW)

    def conv(x2d, cin, w_col, b_row, cout):
        # Single MXU matmul: (cout, 9*cin) @ (9*cin, HW), bf16 in / f32 acc.
        xc = im2col(x2d, cin).astype(jnp.bfloat16)
        acc = jnp.dot(w_col, xc, preferred_element_type=jnp.float32)
        acc = acc + bias_all[b_row:b_row + cout, :]          # f32 epilogue
        return jnp.maximum(acc, 0.0)   # every conv output here feeds a ReLU

    x2d = x_ref[0]                                           # (Cin, HW) f32

    # Stage 1: branch1 / branch2[0] / branch3[0] fused along Cout.
    c_s1 = inter + inter + inter1
    y = conv(x2d, Cin, ws1_ref[...], 0, c_s1)
    x1 = y[0:inter]
    t2 = y[inter:2 * inter]
    t3 = y[2 * inter:2 * inter + inter1]

    # Remaining convs; intermediates stay on-chip.
    x2 = conv(t2, inter, w2b_ref[...], c_s1, inter)
    t3 = conv(t3, inter1, w3b_ref[...], c_s1 + inter, inter1)
    x3 = conv(t3, inter1, w3c_ref[...], c_s1 + inter + inter1, inter1)

    o_ref[0] = jnp.concatenate([x1, x2, x3], axis=0).astype(o_ref.dtype)


def _to_col(w):
    """HWIO (3,3,cin,cout) -> (cout, 9*cin), tap-major / ci-minor K order."""
    cin, cout = w.shape[2], w.shape[3]
    return jnp.transpose(w, (3, 0, 1, 2)).reshape(cout, 9 * cin)


def fem_forward(params, x_nchw):
    N, C, H, W = x_nchw.shape
    inter = C // 3
    inter1 = C - 2 * inter
    HW = H * W

    # Pack the three first-stage convs along Cout; reshape all weights to
    # (Cout, 9*Cin) matmul form; cast to bf16 once here.
    ws1 = jnp.concatenate([_to_col(params["b1"][0]),
                           _to_col(params["b2a"][0]),
                           _to_col(params["b3a"][0])], axis=0).astype(jnp.bfloat16)
    w2b = _to_col(params["b2b"][0]).astype(jnp.bfloat16)
    w3b = _to_col(params["b3b"][0]).astype(jnp.bfloat16)
    w3c = _to_col(params["b3c"][0]).astype(jnp.bfloat16)
    bias = jnp.concatenate([params["b1"][1], params["b2a"][1], params["b3a"][1],
                            params["b2b"][1], params["b3b"][1], params["b3c"][1]
                            ]).reshape(-1, 1).astype(jnp.float32)

    x_flat = x_nchw.reshape(N, C, HW)          # NCHW-native, lane-dense spatial

    kernel = functools.partial(_fem_kernel, H=H, W=W, Cin=C, inter=inter,
                               inter1=inter1, dilation=3)
    out = pl.pallas_call(
        kernel,
        out_shape=jax.ShapeDtypeStruct((N, C, HW), x_nchw.dtype),
        grid=(N,),
        in_specs=[
            pl.BlockSpec((1, C, HW), lambda n: (n, 0, 0)),
            pl.BlockSpec(ws1.shape, lambda n: (0, 0)),
            pl.BlockSpec(w2b.shape, lambda n: (0, 0)),
            pl.BlockSpec(w3b.shape, lambda n: (0, 0)),
            pl.BlockSpec(w3c.shape, lambda n: (0, 0)),
            pl.BlockSpec(bias.shape, lambda n: (0, 0)),
        ],
        out_specs=pl.BlockSpec((1, C, HW), lambda n: (n, 0, 0)),
        compiler_params=pltpu.CompilerParams(
            dimension_semantics=("parallel",)),   # 2 TCs on v7x share the batch
    )(x_flat, ws1, w2b, w3b, w3c, bias)
    return out.reshape(N, C, H, W)


# ---------------------------------------------------------------------------
# Parameter construction
# ---------------------------------------------------------------------------
def init_fem_params(key, in_planes):
    inter = in_planes // 3
    inter1 = in_planes - 2 * inter

    def conv_p(k, cin, cout):
        k1, k2 = jax.random.split(k)
        fan_in = cin * 9
        w = jax.random.normal(k1, (3, 3, cin, cout), jnp.float32) / jnp.sqrt(
            jnp.float32(fan_in))
        b = 0.01 * jax.random.normal(k2, (cout,), jnp.float32)
        return w, b

    keys = jax.random.split(key, 6)
    return {
        "b1":  conv_p(keys[0], in_planes, inter),    # branch1
        "b2a": conv_p(keys[1], in_planes, inter),    # branch2 conv1
        "b2b": conv_p(keys[2], inter, inter),        # branch2 conv2
        "b3a": conv_p(keys[3], in_planes, inter1),   # branch3 conv1
        "b3b": conv_p(keys[4], inter1, inter1),      # branch3 conv2
        "b3c": conv_p(keys[5], inter1, inter1),      # branch3 conv3
    }


# ---------------------------------------------------------------------------
# Pure-JAX reference mirroring the PyTorch forward exactly (f32 everywhere)
# ---------------------------------------------------------------------------
def _ref_conv(x, w, b, relu):
    out = jax.lax.conv_general_dilated(
        x, w, window_strides=(1, 1), padding=((3, 3), (3, 3)),
        rhs_dilation=(3, 3), dimension_numbers=("NHWC", "HWIO", "NHWC"))
    out = out + b
    return jnp.maximum(out, 0.0) if relu else out


def fem_reference(params, x_nchw):
    x = jnp.transpose(x_nchw, (0, 2, 3, 1))
    x1 = _ref_conv(x, *params["b1"], relu=False)
    t = _ref_conv(x, *params["b2a"], relu=True)
    x2 = _ref_conv(t, *params["b2b"], relu=False)
    t = _ref_conv(x, *params["b3a"], relu=True)
    t = _ref_conv(t, *params["b3b"], relu=True)
    x3 = _ref_conv(t, *params["b3c"], relu=False)
    out = jnp.maximum(jnp.concatenate([x1, x2, x3], axis=-1), 0.0)
    return jnp.transpose(out, (0, 3, 1, 2))


if __name__ == "__main__":
    key = jax.random.PRNGKey(0)
    k_param, k_x = jax.random.split(key)

    in_planes = 12          # divisible by 3 -> branches have 4/4/4 channels
    N, H, W = 2, 16, 16
    x = jax.random.normal(k_x, (N, in_planes, H, W), jnp.float32)  # NCHW

    params = init_fem_params(k_param, in_planes)

    out = fem_forward(params, x)
    out = jax.block_until_ready(out)

    ref = jax.block_until_ready(fem_reference(params, x))
    assert out.shape == (N, in_planes, H, W), out.shape
    # bf16 MXU operands with f32 accumulation -> tolerance looser than pure f32.
    assert jnp.allclose(out, ref, atol=5e-2, rtol=5e-2), \
        float(jnp.max(jnp.abs(out - ref)))

    print("KERNEL_OK")
</pallas_src>

<mosaic_0001>
module attributes {stable_mosaic.version = 11 : i64} {
  func.func @_fem_kernel(%arg0: i32, %arg1: memref<1x12x256xf32, #tpu.memory_space<vmem>>, %arg2: memref<12x108xbf16, #tpu.memory_space<vmem>>, %arg3: memref<4x36xbf16, #tpu.memory_space<vmem>>, %arg4: memref<4x36xbf16, #tpu.memory_space<vmem>>, %arg5: memref<4x36xbf16, #tpu.memory_space<vmem>>, %arg6: memref<24x1xf32, #tpu.memory_space<vmem>>, %arg7: memref<1x12x256xf32, #tpu.memory_space<vmem>>) attributes {dimension_semantics = [#tpu.dimension_semantics<parallel>], iteration_bounds = array<i64: 2>, scalar_prefetch = 0 : i64, scratch_operands = 0 : i64, tpu.core_type = #tpu.core_type<tc>, window_params = [{transform_indices = @transform_0, window_bounds = array<i64: 1, 12, 256>}, {pipeline_mode = #tpu.pipeline_mode<synchronous>, transform_indices = @transform_1, window_bounds = array<i64: 12, 108>}, {pipeline_mode = #tpu.pipeline_mode<synchronous>, transform_indices = @transform_2, window_bounds = array<i64: 4, 36>}, {pipeline_mode = #tpu.pipeline_mode<synchronous>, transform_indices = @transform_3, window_bounds = array<i64: 4, 36>}, {pipeline_mode = #tpu.pipeline_mode<synchronous>, transform_indices = @transform_4, window_bounds = array<i64: 4, 36>}, {pipeline_mode = #tpu.pipeline_mode<synchronous>, transform_indices = @transform_5, window_bounds = array<i64: 24, 1>}, {transform_indices = @transform_6, window_bounds = array<i64: 1, 12, 256>}]} {
    %0 = tpu.iota {dimensions = array<i32: 1>} : vector<1x256xi32>
    %c16_i32 = arith.constant 16 : i32
    %c0_i32 = arith.constant 0 : i32
    %1 = arith.cmpi eq, %c16_i32, %c0_i32 : i32
    %c1_i32 = arith.constant 1 : i32
    %2 = arith.select %1, %c1_i32, %c16_i32 : i32
    %3 = vector.broadcast %2 : i32 to vector<1x256xi32>
    %4 = arith.remsi %0, %3 : vector<1x256xi32>
    %c0_i32_0 = arith.constant 0 : i32
    %5 = vector.broadcast %c0_i32_0 : i32 to vector<1x256xi32>
    %6 = arith.cmpi ne, %4, %5 : vector<1x256xi32>
    %c0_i32_1 = arith.constant 0 : i32
    %7 = vector.broadcast %c0_i32_1 : i32 to vector<1x256xi32>
    %8 = arith.cmpi slt, %4, %7 : vector<1x256xi32>
    %c0_i32_2 = arith.constant 0 : i32
    %9 = arith.cmpi slt, %2, %c0_i32_2 : i32
    %10 = vector.broadcast %9 : i1 to vector<1x256xi1>
    %11 = vector.broadcast %10 : vector<1x256xi1> to vector<1x256xi1>
    %12 = arith.xori %8, %11 : vector<1x256xi1>
    %13 = arith.andi %12, %6 : vector<1x256xi1>
    %14 = vector.broadcast %2 : i32 to vector<1x256xi32>
    %15 = arith.addi %4, %14 : vector<1x256xi32>
    %16 = arith.select %13, %15, %4 : vector<1x256xi1>, vector<1x256xi32>
    %c-3_i32 = arith.constant -3 : i32
    %17 = vector.broadcast %c-3_i32 : i32 to vector<1x256xi32>
    %18 = arith.addi %16, %17 : vector<1x256xi32>
    %c0_i32_3 = arith.constant 0 : i32
    %19 = vector.broadcast %c0_i32_3 : i32 to vector<1x256xi32>
    %20 = arith.cmpi sge, %18, %19 : vector<1x256xi32>
    %c-3_i32_4 = arith.constant -3 : i32
    %21 = vector.broadcast %c-3_i32_4 : i32 to vector<1x256xi32>
    %22 = arith.addi %16, %21 : vector<1x256xi32>
    %c16_i32_5 = arith.constant 16 : i32
    %23 = vector.broadcast %c16_i32_5 : i32 to vector<1x256xi32>
    %24 = arith.cmpi slt, %22, %23 : vector<1x256xi32>
    %25 = arith.andi %20, %24 : vector<1x256xi1>
    %c3_i32 = arith.constant 3 : i32
    %26 = vector.broadcast %c3_i32 : i32 to vector<1x256xi32>
    %27 = arith.addi %16, %26 : vector<1x256xi32>
    %c0_i32_6 = arith.constant 0 : i32
    %28 = vector.broadcast %c0_i32_6 : i32 to vector<1x256xi32>
    %29 = arith.cmpi sge, %27, %28 : vector<1x256xi32>
    %c3_i32_7 = arith.constant 3 : i32
    %30 = vector.broadcast %c3_i32_7 : i32 to vector<1x256xi32>
    %31 = arith.addi %16, %30 : vector<1x256xi32>
    %c16_i32_8 = arith.constant 16 : i32
    %32 = vector.broadcast %c16_i32_8 : i32 to vector<1x256xi32>
    %33 = arith.cmpi slt, %31, %32 : vector<1x256xi32>
    %34 = arith.andi %29, %33 : vector<1x256xi1>
    %c0 = arith.constant 0 : index
    %c0_9 = arith.constant 0 : index
    %35 = vector.load %arg6[%c0, %c0_9] : memref<24x1xf32, #tpu.memory_space<vmem>>, vector<24x1xf32>
    %c0_10 = arith.constant 0 : index
    %c0_11 = arith.constant 0 : index
    %c0_12 = arith.constant 0 : index
    %36 = vector.load %arg1[%c0_10, %c0_11, %c0_12] : memref<1x12x256xf32, #tpu.memory_space<vmem>>, vector<1x12x256xf32>
    %37 = vector.shape_cast %36 : vector<1x12x256xf32> to vector<12x256xf32>
    %c0_13 = arith.constant 0 : index
    %c0_14 = arith.constant 0 : index
    %38 = vector.load %arg2[%c0_13, %c0_14] : memref<12x108xbf16, #tpu.memory_space<vmem>>, vector<12x108xbf16>
    %cst = arith.constant 0.000000e+00 : f32
    %39 = vector.broadcast %cst : f32 to vector<12x51xf32>
    %40 = tpu.concatenate %39, %37, %39 in 1 : vector<12x51xf32>, vector<12x256xf32>, vector<12x51xf32> -> vector<12x358xf32>
    %41 = vector.extract_strided_slice %40 {offsets = [0, 0], sizes = [12, 256], strides = [1, 1]} : vector<12x358xf32> to vector<12x256xf32>
    %cst_15 = arith.constant 0.000000e+00 : f32
    %42 = vector.shape_cast %25 : vector<1x256xi1> to vector<1x256xi1>
    %43 = vector.broadcast %42 : vector<1x256xi1> to vector<12x256xi1>
    %44 = vector.broadcast %cst_15 : f32 to vector<12x256xf32>
    %45 = arith.select %43, %41, %44 : vector<12x256xi1>, vector<12x256xf32>
    %46 = vector.extract_strided_slice %40 {offsets = [0, 3], sizes = [12, 256], strides = [1, 1]} : vector<12x358xf32> to vector<12x256xf32>
    %47 = vector.extract_strided_slice %40 {offsets = [0, 6], sizes = [12, 256], strides = [1, 1]} : vector<12x358xf32> to vector<12x256xf32>
    %cst_16 = arith.constant 0.000000e+00 : f32
    %48 = vector.shape_cast %34 : vector<1x256xi1> to vector<1x256xi1>
    %49 = vector.broadcast %48 : vector<1x256xi1> to vector<12x256xi1>
    %50 = vector.broadcast %cst_16 : f32 to vector<12x256xf32>
    %51 = arith.select %49, %47, %50 : vector<12x256xi1>, vector<12x256xf32>
    %52 = vector.extract_strided_slice %40 {offsets = [0, 48], sizes = [12, 256], strides = [1, 1]} : vector<12x358xf32> to vector<12x256xf32>
    %cst_17 = arith.constant 0.000000e+00 : f32
    %53 = vector.shape_cast %25 : vector<1x256xi1> to vector<1x256xi1>
    %54 = vector.broadcast %53 : vector<1x256xi1> to vector<12x256xi1>
    %55 = vector.broadcast %cst_17 : f32 to vector<12x256xf32>
    %56 = arith.select %54, %52, %55 : vector<12x256xi1>, vector<12x256xf32>
    %57 = vector.extract_strided_slice %40 {offsets = [0, 51], sizes = [12, 256], strides = [1, 1]} : vector<12x358xf32> to vector<12x256xf32>
    %58 = vector.extract_strided_slice %40 {offsets = [0, 54], sizes = [12, 256], strides = [1, 1]} : vector<12x358xf32> to vector<12x256xf32>
    %cst_18 = arith.constant 0.000000e+00 : f32
    %59 = vector.shape_cast %34 : vector<1x256xi1> to vector<1x256xi1>
    %60 = vector.broadcast %59 : vector<1x256xi1> to vector<12x256xi1>
    %61 = vector.broadcast %cst_18 : f32 to vector<12x256xf32>
    %62 = arith.select %60, %58, %61 : vector<12x256xi1>, vector<12x256xf32>
    %63 = vector.extract_strided_slice %40 {offsets = [0, 96], sizes = [12, 256], strides = [1, 1]} : vector<12x358xf32> to vector<12x256xf32>
    %cst_19 = arith.constant 0.000000e+00 : f32
    %64 = vector.shape_cast %25 : vector<1x256xi1> to vector<1x256xi1>
    %65 = vector.broadcast %64 : vector<1x256xi1> to vector<12x256xi1>
    %66 = vector.broadcast %cst_19 : f32 to vector<12x256xf32>
    %67 = arith.select %65, %63, %66 : vector<12x256xi1>, vector<12x256xf32>
    %68 = vector.extract_strided_slice %40 {offsets = [0, 99], sizes = [12, 256], strides = [1, 1]} : vector<12x358xf32> to vector<12x256xf32>
    %69 = vector.extract_strided_slice %40 {offsets = [0, 102], sizes = [12, 256], strides = [1, 1]} : vector<12x358xf32> to vector<12x256xf32>
    %cst_20 = arith.constant 0.000000e+00 : f32
    %70 = vector.shape_cast %34 : vector<1x256xi1> to vector<1x256xi1>
    %71 = vector.broadcast %70 : vector<1x256xi1> to vector<12x256xi1>
    %72 = vector.broadcast %cst_20 : f32 to vector<12x256xf32>
    %73 = arith.select %71, %69, %72 : vector<12x256xi1>, vector<12x256xf32>
    %74 = tpu.concatenate %45, %46, %51, %56, %57, %62, %67, %68, %73 in 0 : vector<12x256xf32>, vector<12x256xf32>, vector<12x256xf32>, vector<12x256xf32>, vector<12x256xf32>, vector<12x256xf32>, vector<12x256xf32>, vector<12x256xf32>, vector<12x256xf32> -> vector<108x256xf32>
    %75 = arith.truncf %74 : vector<108x256xf32> to vector<108x256xbf16>
    %cst_21 = arith.constant dense<0.000000e+00> : vector<12x256xf32>
    %76 = tpu.matmul %38, %75, %cst_21 {dimension_numbers = #tpu.dot_dimension_numbers<[1], [0], [0], [1], [0, 0, 1, 1], [], []>} : vector<12x108xbf16>, vector<108x256xbf16>, vector<12x256xf32> -> vector<12x256xf32>
    %77 = vector.extract_strided_slice %35 {offsets = [0, 0], sizes = [12, 1], strides = [1, 1]} : vector<24x1xf32> to vector<12x1xf32>
    %78 = vector.broadcast %77 : vector<12x1xf32> to vector<12x256xf32>
    %79 = arith.addf %76, %78 : vector<12x256xf32>
    %cst_22 = arith.constant 0.000000e+00 : f32
    %80 = vector.broadcast %cst_22 : f32 to vector<12x256xf32>
    %81 = arith.maximumf %79, %80 : vector<12x256xf32>
    %82 = vector.extract_strided_slice %81 {offsets = [0, 0], sizes = [4, 256], strides = [1, 1]} : vector<12x256xf32> to vector<4x256xf32>
    %83 = vector.extract_strided_slice %81 {offsets = [4, 0], sizes = [4, 256], strides = [1, 1]} : vector<12x256xf32> to vector<4x256xf32>
    %84 = vector.extract_strided_slice %81 {offsets = [8, 0], sizes = [4, 256], strides = [1, 1]} : vector<12x256xf32> to vector<4x256xf32>
    %c0_23 = arith.constant 0 : index
    %c0_24 = arith.constant 0 : index
    %85 = vector.load %arg3[%c0_23, %c0_24] : memref<4x36xbf16, #tpu.memory_space<vmem>>, vector<4x36xbf16>
    %cst_25 = arith.constant 0.000000e+00 : f32
    %86 = vector.broadcast %cst_25 : f32 to vector<4x51xf32>
    %87 = tpu.concatenate %86, %83, %86 in 1 : vector<4x51xf32>, vector<4x256xf32>, vector<4x51xf32> -> vector<4x358xf32>
    %88 = vector.extract_strided_slice %87 {offsets = [0, 0], sizes = [4, 256], strides = [1, 1]} : vector<4x358xf32> to vector<4x256xf32>
    %cst_26 = arith.constant 0.000000e+00 : f32
    %89 = vector.shape_cast %25 : vector<1x256xi1> to vector<1x256xi1>
    %90 = vector.broadcast %89 : vector<1x256xi1> to vector<4x256xi1>
    %91 = vector.broadcast %cst_26 : f32 to vector<4x256xf32>
    %92 = arith.select %90, %88, %91 : vector<4x256xi1>, vector<4x256xf32>
    %93 = vector.extract_strided_slice %87 {offsets = [0, 3], sizes = [4, 256], strides = [1, 1]} : vector<4x358xf32> to vector<4x256xf32>
    %94 = vector.extract_strided_slice %87 {offsets = [0, 6], sizes = [4, 256], strides = [1, 1]} : vector<4x358xf32> to vector<4x256xf32>
    %cst_27 = arith.constant 0.000000e+00 : f32
    %95 = vector.shape_cast %34 : vector<1x256xi1> to vector<1x256xi1>
    %96 = vector.broadcast %95 : vector<1x256xi1> to vector<4x256xi1>
    %97 = vector.broadcast %cst_27 : f32 to vector<4x256xf32>
    %98 = arith.select %96, %94, %97 : vector<4x256xi1>, vector<4x256xf32>
    %99 = vector.extract_strided_slice %87 {offsets = [0, 48], sizes = [4, 256], strides = [1, 1]} : vector<4x358xf32> to vector<4x256xf32>
    %cst_28 = arith.constant 0.000000e+00 : f32
    %100 = vector.shape_cast %25 : vector<1x256xi1> to vector<1x256xi1>
    %101 = vector.broadcast %100 : vector<1x256xi1> to vector<4x256xi1>
    %102 = vector.broadcast %cst_28 : f32 to vector<4x256xf32>
    %103 = arith.select %101, %99, %102 : vector<4x256xi1>, vector<4x256xf32>
    %104 = vector.extract_strided_slice %87 {offsets = [0, 51], sizes = [4, 256], strides = [1, 1]} : vector<4x358xf32> to vector<4x256xf32>
    %105 = vector.extract_strided_slice %87 {offsets = [0, 54], sizes = [4, 256], strides = [1, 1]} : vector<4x358xf32> to vector<4x256xf32>
    %cst_29 = arith.constant 0.000000e+00 : f32
    %106 = vector.shape_cast %34 : vector<1x256xi1> to vector<1x256xi1>
    %107 = vector.broadcast %106 : vector<1x256xi1> to vector<4x256xi1>
    %108 = vector.broadcast %cst_29 : f32 to vector<4x256xf32>
    %109 = arith.select %107, %105, %108 : vector<4x256xi1>, vector<4x256xf32>
    %110 = vector.extract_strided_slice %87 {offsets = [0, 96], sizes = [4, 256], strides = [1, 1]} : vector<4x358xf32> to vector<4x256xf32>
    %cst_30 = arith.constant 0.000000e+00 : f32
    %111 = vector.shape_cast %25 : vector<1x256xi1> to vector<1x256xi1>
    %112 = vector.broadcast %111 : vector<1x256xi1> to vector<4x256xi1>
    %113 = vector.broadcast %cst_30 : f32 to vector<4x256xf32>
    %114 = arith.select %112, %110, %113 : vector<4x256xi1>, vector<4x256xf32>
    %115 = vector.extract_strided_slice %87 {offsets = [0, 99], sizes = [4, 256], strides = [1, 1]} : vector<4x358xf32> to vector<4x256xf32>
    %116 = vector.extract_strided_slice %87 {offsets = [0, 102], sizes = [4, 256], strides = [1, 1]} : vector<4x358xf32> to vector<4x256xf32>
    %cst_31 = arith.constant 0.000000e+00 : f32
    %117 = vector.shape_cast %34 : vector<1x256xi1> to vector<1x256xi1>
    %118 = vector.broadcast %117 : vector<1x256xi1> to vector<4x256xi1>
    %119 = vector.broadcast %cst_31 : f32 to vector<4x256xf32>
    %120 = arith.select %118, %116, %119 : vector<4x256xi1>, vector<4x256xf32>
    %121 = tpu.concatenate %92, %93, %98, %103, %104, %109, %114, %115, %120 in 0 : vector<4x256xf32>, vector<4x256xf32>, vector<4x256xf32>, vector<4x256xf32>, vector<4x256xf32>, vector<4x256xf32>, vector<4x256xf32>, vector<4x256xf32>, vector<4x256xf32> -> vector<36x256xf32>
    %122 = arith.truncf %121 : vector<36x256xf32> to vector<36x256xbf16>
    %cst_32 = arith.constant dense<0.000000e+00> : vector<4x256xf32>
    %123 = tpu.matmul %85, %122, %cst_32 {dimension_numbers = #tpu.dot_dimension_numbers<[1], [0], [0], [1], [0, 0, 1, 1], [], []>} : vector<4x36xbf16>, vector<36x256xbf16>, vector<4x256xf32> -> vector<4x256xf32>
    %124 = vector.extract_strided_slice %35 {offsets = [12, 0], sizes = [4, 1], strides = [1, 1]} : vector<24x1xf32> to vector<4x1xf32>
    %125 = vector.broadcast %124 : vector<4x1xf32> to vector<4x256xf32>
    %126 = arith.addf %123, %125 : vector<4x256xf32>
    %cst_33 = arith.constant 0.000000e+00 : f32
    %127 = vector.broadcast %cst_33 : f32 to vector<4x256xf32>
    %128 = arith.maximumf %126, %127 : vector<4x256xf32>
    %c0_34 = arith.constant 0 : index
    %c0_35 = arith.constant 0 : index
    %129 = vector.load %arg4[%c0_34, %c0_35] : memref<4x36xbf16, #tpu.memory_space<vmem>>, vector<4x36xbf16>
    %cst_36 = arith.constant 0.000000e+00 : f32
    %130 = vector.broadcast %cst_36 : f32 to vector<4x51xf32>
    %131 = tpu.concatenate %130, %84, %130 in 1 : vector<4x51xf32>, vector<4x256xf32>, vector<4x51xf32> -> vector<4x358xf32>
    %132 = vector.extract_strided_slice %131 {offsets = [0, 0], sizes = [4, 256], strides = [1, 1]} : vector<4x358xf32> to vector<4x256xf32>
    %cst_37 = arith.constant 0.000000e+00 : f32
    %133 = vector.shape_cast %25 : vector<1x256xi1> to vector<1x256xi1>
    %134 = vector.broadcast %133 : vector<1x256xi1> to vector<4x256xi1>
    %135 = vector.broadcast %cst_37 : f32 to vector<4x256xf32>
    %136 = arith.select %134, %132, %135 : vector<4x256xi1>, vector<4x256xf32>
    %137 = vector.extract_strided_slice %131 {offsets = [0, 3], sizes = [4, 256], strides = [1, 1]} : vector<4x358xf32> to vector<4x256xf32>
    %138 = vector.extract_strided_slice %131 {offsets = [0, 6], sizes = [4, 256], strides = [1, 1]} : vector<4x358xf32> to vector<4x256xf32>
    %cst_38 = arith.constant 0.000000e+00 : f32
    %139 = vector.shape_cast %34 : vector<1x256xi1> to vector<1x256xi1>
    %140 = vector.broadcast %139 : vector<1x256xi1> to vector<4x256xi1>
    %141 = vector.broadcast %cst_38 : f32 to vector<4x256xf32>
    %142 = arith.select %140, %138, %141 : vector<4x256xi1>, vector<4x256xf32>
    %143 = vector.extract_strided_slice %131 {offsets = [0, 48], sizes = [4, 256], strides = [1, 1]} : vector<4x358xf32> to vector<4x256xf32>
    %cst_39 = arith.constant 0.000000e+00 : f32
    %144 = vector.shape_cast %25 : vector<1x256xi1> to vector<1x256xi1>
    %145 = vector.broadcast %144 : vector<1x256xi1> to vector<4x256xi1>
    %146 = vector.broadcast %cst_39 : f32 to vector<4x256xf32>
    %147 = arith.select %145, %143, %146 : vector<4x256xi1>, vector<4x256xf32>
    %148 = vector.extract_strided_slice %131 {offsets = [0, 51], sizes = [4, 256], strides = [1, 1]} : vector<4x358xf32> to vector<4x256xf32>
    %149 = vector.extract_strided_slice %131 {offsets = [0, 54], sizes = [4, 256], strides = [1, 1]} : vector<4x358xf32> to vector<4x256xf32>
    %cst_40 = arith.constant 0.000000e+00 : f32
    %150 = vector.shape_cast %34 : vector<1x256xi1> to vector<1x256xi1>
    %151 = vector.broadcast %150 : vector<1x256xi1> to vector<4x256xi1>
    %152 = vector.broadcast %cst_40 : f32 to vector<4x256xf32>
    %153 = arith.select %151, %149, %152 : vector<4x256xi1>, vector<4x256xf32>
    %154 = vector.extract_strided_slice %131 {offsets = [0, 96], sizes = [4, 256], strides = [1, 1]} : vector<4x358xf32> to vector<4x256xf32>
    %cst_41 = arith.constant 0.000000e+00 : f32
    %155 = vector.shape_cast %25 : vector<1x256xi1> to vector<1x256xi1>
    %156 = vector.broadcast %155 : vector<1x256xi1> to vector<4x256xi1>
    %157 = vector.broadcast %cst_41 : f32 to vector<4x256xf32>
    %158 = arith.select %156, %154, %157 : vector<4x256xi1>, vector<4x256xf32>
    %159 = vector.extract_strided_slice %131 {offsets = [0, 99], sizes = [4, 256], strides = [1, 1]} : vector<4x358xf32> to vector<4x256xf32>
    %160 = vector.extract_strided_slice %131 {offsets = [0, 102], sizes = [4, 256], strides = [1, 1]} : vector<4x358xf32> to vector<4x256xf32>
    %cst_42 = arith.constant 0.000000e+00 : f32
    %161 = vector.shape_cast %34 : vector<1x256xi1> to vector<1x256xi1>
    %162 = vector.broadcast %161 : vector<1x256xi1> to vector<4x256xi1>
    %163 = vector.broadcast %cst_42 : f32 to vector<4x256xf32>
    %164 = arith.select %162, %160, %163 : vector<4x256xi1>, vector<4x256xf32>
    %165 = tpu.concatenate %136, %137, %142, %147, %148, %153, %158, %159, %164 in 0 : vector<4x256xf32>, vector<4x256xf32>, vector<4x256xf32>, vector<4x256xf32>, vector<4x256xf32>, vector<4x256xf32>, vector<4x256xf32>, vector<4x256xf32>, vector<4x256xf32> -> vector<36x256xf32>
    %166 = arith.truncf %165 : vector<36x256xf32> to vector<36x256xbf16>
    %cst_43 = arith.constant dense<0.000000e+00> : vector<4x256xf32>
    %167 = tpu.matmul %129, %166, %cst_43 {dimension_numbers = #tpu.dot_dimension_numbers<[1], [0], [0], [1], [0, 0, 1, 1], [], []>} : vector<4x36xbf16>, vector<36x256xbf16>, vector<4x256xf32> -> vector<4x256xf32>
    %168 = vector.extract_strided_slice %35 {offsets = [16, 0], sizes = [4, 1], strides = [1, 1]} : vector<24x1xf32> to vector<4x1xf32>
    %169 = vector.broadcast %168 : vector<4x1xf32> to vector<4x256xf32>
    %170 = arith.addf %167, %169 : vector<4x256xf32>
    %cst_44 = arith.constant 0.000000e+00 : f32
    %171 = vector.broadcast %cst_44 : f32 to vector<4x256xf32>
    %172 = arith.maximumf %170, %171 : vector<4x256xf32>
    %c0_45 = arith.constant 0 : index
    %c0_46 = arith.constant 0 : index
    %173 = vector.load %arg5[%c0_45, %c0_46] : memref<4x36xbf16, #tpu.memory_space<vmem>>, vector<4x36xbf16>
    %cst_47 = arith.constant 0.000000e+00 : f32
    %174 = vector.broadcast %cst_47 : f32 to vector<4x51xf32>
    %175 = tpu.concatenate %174, %172, %174 in 1 : vector<4x51xf32>, vector<4x256xf32>, vector<4x51xf32> -> vector<4x358xf32>
    %176 = vector.extract_strided_slice %175 {offsets = [0, 0], sizes = [4, 256], strides = [1, 1]} : vector<4x358xf32> to vector<4x256xf32>
    %cst_48 = arith.constant 0.000000e+00 : f32
    %177 = vector.shape_cast %25 : vector<1x256xi1> to vector<1x256xi1>
    %178 = vector.broadcast %177 : vector<1x256xi1> to vector<4x256xi1>
    %179 = vector.broadcast %cst_48 : f32 to vector<4x256xf32>
    %180 = arith.select %178, %176, %179 : vector<4x256xi1>, vector<4x256xf32>
    %181 = vector.extract_strided_slice %175 {offsets = [0, 3], sizes = [4, 256], strides = [1, 1]} : vector<4x358xf32> to vector<4x256xf32>
    %182 = vector.extract_strided_slice %175 {offsets = [0, 6], sizes = [4, 256], strides = [1, 1]} : vector<4x358xf32> to vector<4x256xf32>
    %cst_49 = arith.constant 0.000000e+00 : f32
    %183 = vector.shape_cast %34 : vector<1x256xi1> to vector<1x256xi1>
    %184 = vector.broadcast %183 : vector<1x256xi1> to vector<4x256xi1>
    %185 = vector.broadcast %cst_49 : f32 to vector<4x256xf32>
    %186 = arith.select %184, %182, %185 : vector<4x256xi1>, vector<4x256xf32>
    %187 = vector.extract_strided_slice %175 {offsets = [0, 48], sizes = [4, 256], strides = [1, 1]} : vector<4x358xf32> to vector<4x256xf32>
    %cst_50 = arith.constant 0.000000e+00 : f32
    %188 = vector.shape_cast %25 : vector<1x256xi1> to vector<1x256xi1>
    %189 = vector.broadcast %188 : vector<1x256xi1> to vector<4x256xi1>
    %190 = vector.broadcast %cst_50 : f32 to vector<4x256xf32>
    %191 = arith.select %189, %187, %190 : vector<4x256xi1>, vector<4x256xf32>
    %192 = vector.extract_strided_slice %175 {offsets = [0, 51], sizes = [4, 256], strides = [1, 1]} : vector<4x358xf32> to vector<4x256xf32>
    %193 = vector.extract_strided_slice %175 {offsets = [0, 54], sizes = [4, 256], strides = [1, 1]} : vector<4x358xf32> to vector<4x256xf32>
    %cst_51 = arith.constant 0.000000e+00 : f32
    %194 = vector.shape_cast %34 : vector<1x256xi1> to vector<1x256xi1>
    %195 = vector.broadcast %194 : vector<1x256xi1> to vector<4x256xi1>
    %196 = vector.broadcast %cst_51 : f32 to vector<4x256xf32>
    %197 = arith.select %195, %193, %196 : vector<4x256xi1>, vector<4x256xf32>
    %198 = vector.extract_strided_slice %175 {offsets = [0, 96], sizes = [4, 256], strides = [1, 1]} : vector<4x358xf32> to vector<4x256xf32>
    %cst_52 = arith.constant 0.000000e+00 : f32
    %199 = vector.shape_cast %25 : vector<1x256xi1> to vector<1x256xi1>
    %200 = vector.broadcast %199 : vector<1x256xi1> to vector<4x256xi1>
    %201 = vector.broadcast %cst_52 : f32 to vector<4x256xf32>
    %202 = arith.select %200, %198, %201 : vector<4x256xi1>, vector<4x256xf32>
    %203 = vector.extract_strided_slice %175 {offsets = [0, 99], sizes = [4, 256], strides = [1, 1]} : vector<4x358xf32> to vector<4x256xf32>
    %204 = vector.extract_strided_slice %175 {offsets = [0, 102], sizes = [4, 256], strides = [1, 1]} : vector<4x358xf32> to vector<4x256xf32>
    %cst_53 = arith.constant 0.000000e+00 : f32
    %205 = vector.shape_cast %34 : vector<1x256xi1> to vector<1x256xi1>
    %206 = vector.broadcast %205 : vector<1x256xi1> to vector<4x256xi1>
    %207 = vector.broadcast %cst_53 : f32 to vector<4x256xf32>
    %208 = arith.select %206, %204, %207 : vector<4x256xi1>, vector<4x256xf32>
    %209 = tpu.concatenate %180, %181, %186, %191, %192, %197, %202, %203, %208 in 0 : vector<4x256xf32>, vector<4x256xf32>, vector<4x256xf32>, vector<4x256xf32>, vector<4x256xf32>, vector<4x256xf32>, vector<4x256xf32>, vector<4x256xf32>, vector<4x256xf32> -> vector<36x256xf32>
    %210 = arith.truncf %209 : vector<36x256xf32> to vector<36x256xbf16>
    %cst_54 = arith.constant dense<0.000000e+00> : vector<4x256xf32>
    %211 = tpu.matmul %173, %210, %cst_54 {dimension_numbers = #tpu.dot_dimension_numbers<[1], [0], [0], [1], [0, 0, 1, 1], [], []>} : vector<4x36xbf16>, vector<36x256xbf16>, vector<4x256xf32> -> vector<4x256xf32>
    %212 = vector.extract_strided_slice %35 {offsets = [20, 0], sizes = [4, 1], strides = [1, 1]} : vector<24x1xf32> to vector<4x1xf32>
    %213 = vector.broadcast %212 : vector<4x1xf32> to vector<4x256xf32>
    %214 = arith.addf %211, %213 : vector<4x256xf32>
    %cst_55 = arith.constant 0.000000e+00 : f32
    %215 = vector.broadcast %cst_55 : f32 to vector<4x256xf32>
    %216 = arith.maximumf %214, %215 : vector<4x256xf32>
    %217 = tpu.concatenate %82, %128, %216 in 0 : vector<4x256xf32>, vector<4x256xf32>, vector<4x256xf32> -> vector<12x256xf32>
    %c0_56 = arith.constant 0 : index
    %c0_57 = arith.constant 0 : index
    %c0_58 = arith.constant 0 : index
    %218 = vector.load %arg7[%c0_56, %c0_57, %c0_58] : memref<1x12x256xf32, #tpu.memory_space<vmem>>, vector<1x12x256xf32>
    %219 = vector.shape_cast %218 : vector<1x12x256xf32> to vector<12x256xf32>
    %220 = vector.shape_cast %217 : vector<12x256xf32> to vector<1x12x256xf32>
    tpu.vector_store %arg7[%c0_56, %c0_57, %c0_58], %220 {strides = array<i32>} : memref<1x12x256xf32, #tpu.memory_space<vmem>>, vector<1x12x256xf32>,
    return
  }
  func.func @transform_0(%arg0: i32) -> (i32, i32, i32) {
    %c0_i32 = arith.constant 0 : i32
    %c0_i32_0 = arith.constant 0 : i32
    %c0_i32_1 = arith.constant 0 : i32
    return %arg0, %c0_i32, %c0_i32_0 : i32, i32, i32
  }
  func.func @transform_1(%arg0: i32) -> (i32, i32) {
    %c0_i32 = arith.constant 0 : i32
    %c0_i32_0 = arith.constant 0 : i32
    %c0_i32_1 = arith.constant 0 : i32
    return %c0_i32, %c0_i32_0 : i32, i32
  }
  func.func @transform_2(%arg0: i32) -> (i32, i32) {
    %c0_i32 = arith.constant 0 : i32
    %c0_i32_0 = arith.constant 0 : i32
    %c0_i32_1 = arith.constant 0 : i32
    return %c0_i32, %c0_i32_0 : i32, i32
  }
  func.func @transform_3(%arg0: i32) -> (i32, i32) {
    %c0_i32 = arith.constant 0 : i32
    %c0_i32_0 = arith.constant 0 : i32
    %c0_i32_1 = arith.constant 0 : i32
    return %c0_i32, %c0_i32_0 : i32, i32
  }
  func.func @transform_4(%arg0: i32) -> (i32, i32) {
    %c0_i32 = arith.constant 0 : i32
    %c0_i32_0 = arith.constant 0 : i32
    %c0_i32_1 = arith.constant 0 : i32
    return %c0_i32, %c0_i32_0 : i32, i32
  }
  func.func @transform_5(%arg0: i32) -> (i32, i32) {
    %c0_i32 = arith.constant 0 : i32
    %c0_i32_0 = arith.constant 0 : i32
    %c0_i32_1 = arith.constant 0 : i32
    return %c0_i32, %c0_i32_0 : i32, i32
  }
  func.func @transform_6(%arg0: i32) -> (i32, i32, i32) {
    %c0_i32 = arith.constant 0 : i32
    %c0_i32_0 = arith.constant 0 : i32
    %c0_i32_1 = arith.constant 0 : i32
    return %arg0, %c0_i32, %c0_i32_0 : i32, i32, i32
  }
}

</mosaic_0001>

<bundles_post_ra>
// kernel: tpu_custom_call.1
= control target key start
LH: loop header
LB: loop body
LE: loop exit
PB: predicated region body
PF: predicated region fallthrough
CT: control target
= control target key end

     0   :  { %s1670_s21 = smov 0   ;;  %s2268_s0 = inlined_call_operand.vmem [shape: f32[2,12,256], index: 0, kind: input, shape index: {}]   ;;  %s2269_s1 = inlined_call_operand.vmem [shape: bf16[12,108], index: 1, kind: input, shape index: {}]   ;;  %s2270_s2 = inlined_call_operand.vmem [shape: bf16[4,36], index: 2, kind: input, shape index: {}]   ;;  %s2271_s3 = inlined_call_operand.vmem [shape: bf16[4,36], index: 3, kind: input, shape index: {}]   ;;  %s2272_s4 = inlined_call_operand.vmem [shape: bf16[4,36], index: 4, kind: input, shape index: {}]   ;;  %s2273_s5 = inlined_call_operand.vmem [shape: f32[24,1], index: 5, kind: input, shape index: {}]   ;;  %s2274_s6 = inlined_call_operand.vmem [shape: f32[2,12,256], index: 6, kind: output, shape index: {}]  }
   0x1 LB: > { %s1251_s22 = sadd.s32 4294967295, %s1622_s21   ;;  %p1255_p0 = scmp.ge.s32.totalorder %s1622_s21, 1  ;;  %s1622_s21 = sphi %s1670_s21, %s16_s21  }
   0x2   : > { %p212_p1 = scmp.lt.s32.totalorder %s1622_s21, 3 }
   0x4   : > { %p213_p2 = pnand %p1255_p0, %p212_p1 }
   0x5   : > { %p242_p3 = scmp.lt.s32.totalorder (!%p213_p2), %s1251_s22, 1  ;;  %s1624_s27 = smov (!%p213_p2), 51  }
   0x6   : > { %216 = sbr.rel (%p213_p2) target bundleno = 1321 (0x529), region = 44  ;;  %s1625_s28 = smov (!%p213_p2), 26  }
   0x7   : > { %s1626_s29 = smov (!%p213_p2), 32   ;;  %s1627_s30 = smov (!%p213_p2), 74  }
   0x8   : > { %s1628_s7 = smov (!%p213_p2), 77   ;;  %s1629_s8 = smov (!%p213_p2), 80  }
   0x9   : > { %s1630_s9 = smov (!%p213_p2), 29   ;;  %s1631_s10 = smov (!%p213_p2), 122  }
   0xa   : > { %s1632_s11 = smov (!%p213_p2), 125  }
   0xb   : > { %s2292_s22 = smov (!%p242_p3, %s1251_s22), 1  ;;  %vm317_vm0 = vcmask 416768   ;;  %vm471_vm1 = vcmask 1043456   ;;  %v253_v40 = vlaneseq  ;;  %vm458_vm2 = vcmask 211968  }
   0xc   : > { %s1292_s23 = sshll.u32 %s2292_s22, 5  ;;  %vm613_vm5 = vcmask 1045504   ;;  %vm408_vm6 = vcmask 605184   ;;  %vm433_vm7 = vcmask 261120   ;;  %vm528_vm9 = vcmask 629760  }
   0xd   : > { %s246_s26 = scalar_lea.vmem %s2268_s0, %s1292_s23  ;;  %v254_v42 = vand.u32 127, %v253_v40  ;;  %vm2275_vm10 = vcmask 654336   ;;  %vm2277_vm12 = vcmask 236544   ;;  %vm2276_vm13 = vcmask 998400   ;;  %s2163_s16 = scalar_lea.vmem %s2274_s6, %s1292_s23 }
   0xe   : > { %v299_v0 = vld [vmem:[%s246_s26] sm:$0xff]  ;;  %v300_v1 = vld [vmem:[%s246_s26 + $0x8] sm:$0xff]  ;;  %v301_v3 = vld [vmem:[%s246_s26 + $0x10] sm:$0xf]  ;;  %vm1634_vm14 = vmmov 1  }
   0xf   : > { %v1314_v2 = vpack.i.bf16 %v300_v1, %v299_v0  ;;  %v302_v4 = vld [vmem:[%s246_s26 + $0x18] sm:$0xf]  ;;  %v255_v43 = vadd.s32 128, %v254_v42  ;;  %v260_v47 = vand.u32 15, %v254_v42 }
  0x10   : > { %v1319_v5 = vpack.i.bf16 %v302_v4, %v301_v3 }
  0x11   : > { %1315 = vrot.lane.b32.xlu0 %v1314_v2, %s1624_s27  ;;  %v267_v46 = vand.u32 15, %v255_v43  ;;  %v1745_v49 = vadd.s32 3, %v260_v47 }
  0x13   : > { %v1743_v48 = vadd.s32 3, %v267_v46  ;;  %vm292_vm4 = vcmp.lt.s32.totalorder %v1745_v49, 16 }
  0x15   : > { %vm293_vm3 = vcmp.lt.s32.totalorder %v1743_v48, 16 }
  0x19   : > { %1320 = vrot.lane.b32.xlu0 %v1319_v5, %s1624_s27 }
  0x83   : > { %v1316_v6 = vpop.permute.xlu0 %1315 }
  0x84   : > { %v1318_v7 = vunpack.i.h.bf16 %v1316_v6  ;;  %v1317_v8 = vunpack.i.l.bf16 %v1316_v6 }
  0x86   : > { %v1689_v9 = vsel %vm317_vm0, %v1317_v8, %v1318_v7  ;;  %v1692_v10 = vsel %vm317_vm0, 0.0, %v1317_v8  ;;  %v328_v15 = vsel %vm317_vm0, %v1318_v7, 0.0 }
  0x87   : > { %v1324_v11 = vpack.i.bf16 %v1689_v9, %v1692_v10  ;;  %v1364_v23 = vpack.i.bf16 %v328_v15, %v1689_v9  ;;  %v472_v27 = vrot.slane %v1692_v10, 4  ;;  %v474_v28 = vrot.slane %v328_v15, 4 }
  0x88   : > { %v473_v29 = vrot.slane %v1689_v9, 4 }
  0x89   : > { %1325 = vrot.lane.b32.xlu1 %v1324_v11, %s1625_s28 }
  0x8a   : > { %v1384_v35 = vpack.i.bf16 %v473_v29, %v472_v27  ;;  %v1439_v38 = vpack.i.bf16 %v474_v28, %v473_v29 }
  0x8b   : > { %v1321_v12 = vpop.permute.xlu0 %1320 }
  0x8c   : > { %v1323_v13 = vunpack.i.h.bf16 %v1321_v12  ;;  %v1322_v14 = vunpack.i.l.bf16 %v1321_v12 }
  0x8e   : > { %v329_v16 = vsel %vm317_vm0, %v1323_v13, 0.0  ;;  %v1700_v17 = vsel %vm317_vm0, %v1322_v14, %v1323_v13  ;;  %v1703_v18 = vsel %vm317_vm0, 0.0, %v1322_v14 }
  0x8f   : > { %v1334_v19 = vpack.i.bf16 %v329_v16, %v1700_v17  ;;  %v1344_v20 = vpack.i.bf16 %v1692_v10, %v329_v16  ;;  %v1329_v21 = vpack.i.bf16 %v1703_v18, %v328_v15  ;;  %v1339_v22 = vpack.i.bf16 %v1700_v17, %v1703_v18 }
  0x90   : > { %v475_v24 = vrot.slane %v1703_v18, 4  ;;  %v477_v25 = vrot.slane %v1700_v17, 4  ;;  %v479_v26 = vrot.slane %v329_v16, 4 }
  0x91   : > { %1335 = vrot.lane.b32.xlu2 %v1334_v19, %s1625_s28  ;;  %1345 = vrot.lane.b32.xlu0 %v1344_v20, %s1626_s29 }
  0x92   : > { %1330 = vrot.lane.b32.xlu1 %v1329_v21, %s1625_s28  ;;  %v476_v30 = vsel %vm471_vm1, %v472_v27, %v475_v24  ;;  %v478_v31 = vsel %vm471_vm1, %v473_v29, %v477_v25  ;;  %v480_v32 = vsel %vm471_vm1, %v474_v28, %v479_v26  ;;  %v1772_v25 = vadd.s32 4294967293, %v260_v47 }
  0x93   : > { %v1389_v33 = vpack.i.bf16 %v476_v30, %v474_v28  ;;  %v1414_v34 = vpack.i.bf16 %v480_v32, %v478_v31  ;;  %v1434_v36 = vpack.i.bf16 %v472_v27, %v480_v32  ;;  %v1429_v37 = vpack.i.bf16 %v478_v31, %v476_v30 }
  0x94   : > { %v1775_v27 = vadd.s32 4294967293, %v267_v46  ;;  %vm282_vm8 = vcmp.ge.s32.totalorder %v1772_v25, 0 }
  0x95   : > { %vm1854_vm15 = vmpackc.low %vm282_vm8, %vm1634_vm14 }
  0x96   : > { %vm283_vm11 = vcmp.ge.s32.totalorder %v1775_v27, 0 }
  0x99   : > { %1340 = vrot.lane.b32.xlu2 %v1339_v22, %s1626_s29  ;;  %1350 = vrot.lane.b32.xlu0 %v1324_v11, %s1627_s30 }
  0x9a   : > { %1355 = vrot.lane.b32.xlu1 %v1329_v21, %s1627_s30 }
  0xa1   : > { %1360 = vrot.lane.b32.xlu2 %v1334_v19, %s1627_s30  ;;  %1375 = vrot.lane.b32.xlu0 %v1344_v20, %s1628_s7 }
  0xa2   : > { %1365 = vrot.lane.b32.xlu1 %v1364_v23, %s1626_s29 }
  0xa9   : > { %1370 = vrot.lane.b32.xlu2 %v1339_v22, %s1628_s7  ;;  %1400 = vrot.lane.b32.xlu0 %v1334_v19, %s1629_s8 }
  0xaa   : > { %1380 = vrot.lane.b32.xlu1 %v1324_v11, %s1629_s8 }
  0xb1   : > { %1390 = vrot.lane.b32.xlu2 %v1389_v33, %s1630_s9  ;;  %1415 = vrot.lane.b32.xlu0 %v1414_v34, %s1630_s9 }
  0xb2   : > { %1385 = vrot.lane.b32.xlu1 %v1384_v35, %s1630_s9 }
  0xb9   : > { %1395 = vrot.lane.b32.xlu2 %v1329_v21, %s1629_s8  ;;  %1420 = vrot.lane.b32.xlu0 %v1344_v20, %s1631_s10 }
  0xba   : > { %1405 = vrot.lane.b32.xlu1 %v1364_v23, %s1628_s7 }
  0xc1   : > { %1410 = vrot.lane.b32.xlu2 %v1339_v22, %s1631_s10  ;;  %1435 = vrot.lane.b32.xlu0 %v1434_v36, %s1632_s11 }
  0xc2   : > { %1425 = vrot.lane.b32.xlu1 %v1364_v23, %s1631_s10 }
  0xc9   : > { %1430 = vrot.lane.b32.xlu2 %v1429_v37, %s1632_s11 }
  0xca   : > { %1440 = vrot.lane.b32.xlu1 %v1439_v38, %s1632_s11 }
  0xeb   : > { %v1336_v39 = vpop.permute.xlu2 %1335 }
  0xec   : > { %v1338_v50 = vunpack.i.h.bf16 %v1336_v39  ;;  %v1337_v51 = vunpack.i.l.bf16 %v1336_v39 }
  0xee   : > { %v462_v59 = vsel %vm458_vm2, %v1337_v51, %v1338_v50 }
  0xef   : > { %v470_v2 = vsel %vm293_vm3, %v462_v59, 0.0 }
  0xf3   : > { %v1741_v41 = vpop.permute.xlu2 %1340 }
  0xf4   : > { %v1343_v16 = vunpack.i.h.bf16 %v1741_v41  ;;  %v1342_v19 = vunpack.i.l.bf16 %v1741_v41 }
  0xf6   : > { %v436_v31 = vsel %vm433_vm7, %v1342_v19, %v1343_v16 }
  0xf7   : > { %v444_v38 = vsel %vm282_vm8, %v436_v31, 0.0 }
  0xfb   : > { %v1326_v44 = vpop.permute.xlu1 %1325  ;;  %v1361_v45 = vpop.permute.xlu2 %1360 }
  0xfc   : > { %v1328_v52 = vunpack.i.h.bf16 %v1326_v44  ;;  %v1327_v53 = vunpack.i.l.bf16 %v1326_v44  ;;  %v1363_v13 = vunpack.i.h.bf16 %v1361_v45  ;;  %v1362_v14 = vunpack.i.l.bf16 %v1361_v45 }
  0xfe   : > { %v459_v58 = vsel %vm458_vm2, %v1327_v53, %v1328_v52  ;;  %v412_v20 = vsel %vm408_vm6, %v1362_v14, %v1363_v13 }
  0xff   : > { %v467_v63 = vsel %vm292_vm4, %v459_v58, 0.0  ;;  %v1779_v28 = vsel %vm293_vm3, %v412_v20, 0.0 }
 0x100   : > { %v545_v40 = vrot.slane %v1779_v28, 4 }
 0x103   : > { %v1747_v54 = vpop.permute.xlu0 %1345  ;;  %v1753_v60 = vpop.permute.xlu2 %1370 }
 0x104   : > { %v1331_v55 = vpop.permute.xlu1 %1330  ;;  %v1347_v26 = vunpack.i.l.bf16 %v1747_v54  ;;  %v1373_v32 = vunpack.i.h.bf16 %v1753_v60  ;;  %v1372_v33 = vunpack.i.l.bf16 %v1753_v60  ;;  %v1348_v41 = vunpack.i.h.bf16 %v1747_v54 }
 0x105   : > { %v1333_v56 = vunpack.i.h.bf16 %v1331_v55  ;;  %v1332_v57 = vunpack.i.l.bf16 %v1331_v55 }
 0x106   : > { %v437_v39 = vsel %vm433_vm7, %v1343_v16, %v1347_v26  ;;  %v1811_v46 = vsel %vm528_vm9, %v1372_v33, %v1373_v32 }
 0x107   : > { %v461_v61 = vsel %vm458_vm2, %v1333_v56, %v1337_v51  ;;  %v460_v62 = vsel %vm458_vm2, %v1328_v52, %v1332_v57  ;;  %v445_v52 = vsel %vm283_vm11, %v437_v39, 0.0 }
 0x108   : > { %v469_v0 = vsel %vm292_vm4, %v461_v61, 0.0  ;;  %v468_v1 = vsel %vm293_vm3, %v460_v62, 0.0 }
 0x109   : > { %v592_v3 = vpack.c.bf16 %v469_v0, %v467_v63  ;;  %v593_v4 = vpack.c.bf16 %v470_v2, %v468_v1 }
 0x10b   : > { %v1351_v5 = vpop.permute.xlu0 %1350  ;;  %v615_v6 = vsel %vm613_vm5, %v592_v3, 0  ;;  %v618_v7 = vsel %vm613_vm5, %v593_v4, 0  ;;  %v1765_v11 = vpop.permute.xlu2 %1390  ;;  %vm1274_vm5 = vmpackc.low %vm283_vm11, %vm1634_vm14 }
 0x10c   : > { %v1356_v8 = vpop.permute.xlu1 %1355  ;;  %621 = vmatpush.bf16.msra.mxu0 %v615_v6  ;;  %635 = vmatpush.bf16.msra.mxu1 %v618_v7  ;;  %v1353_v21 = vunpack.i.h.bf16 %v1351_v5  ;;  %v1352_v22 = vunpack.i.l.bf16 %v1351_v5  ;;  %v1393_v47 = vunpack.i.h.bf16 %v1765_v11  ;;  %v1392_v50 = vunpack.i.l.bf16 %v1765_v11 }
 0x10d   : > { %v1358_v23 = vunpack.i.h.bf16 %v1356_v8  ;;  %v1357_v24 = vunpack.i.l.bf16 %v1356_v8 }
 0x10e   : > { %v409_v34 = vsel %vm408_vm6, %v1352_v22, %v1353_v21  ;;  %v1633_v22 = vmov 0  }
 0x10f   : > { %v411_v35 = vsel %vm408_vm6, %v1358_v23, %v1362_v14  ;;  %v410_v37 = vsel %vm408_vm6, %v1353_v21, %v1357_v24  ;;  %v1800_v42 = vsel %vm292_vm4, %v409_v34, 0.0  ;;  %v297_v14 = vld [vmem:[%s2273_s5 + $0x8] sm:$0xff]  ;;  %1445 = vset.pattern.permute.xlu0 %v1633_v22  ;;  %1444 = vset.pattern.permute.xlu2 %v1633_v22 }
 0x110   : > { %v419_v43 = vsel %vm292_vm4, %v411_v35, 0.0  ;;  %v1806_v44 = vsel %vm293_vm3, %v410_v37, 0.0  ;;  %v541_v53 = vrot.slane %v1800_v42, 4  ;;  %601 = vperm.xlu0 %1445, %v297_v14  }
 0x111   : > { %v543_v54 = vrot.slane %v419_v43, 4  ;;  %v542_v56 = vrot.slane %v1806_v44, 4 }
 0x113   : > { %v1767_v12 = vpop.permute.xlu0 %1375  ;;  %v1781_v29 = vpop.permute.xlu2 %1395  ;;  %v544_v35 = vsel %vm471_vm1, %v541_v53, %v543_v54 }
 0x114   : > { %v1366_v15 = vpop.permute.xlu1 %1365  ;;  %v1398_v57 = vunpack.i.h.bf16 %v1781_v29  ;;  %v1397_v62 = vunpack.i.l.bf16 %v1781_v29  ;;  %v1377_v16 = vunpack.i.l.bf16 %v1767_v12 }
 0x115   : > { %v1367_v45 = vunpack.i.l.bf16 %v1366_v15  ;;  %v1368_v51 = vunpack.i.h.bf16 %v1366_v15  ;;  %v296_v15 = vld [vmem:[%s2273_s5] sm:$0xff] }
 0x116   : > { %596 = vperm.xlu2 %1444, %v296_v15  }
 0x117   : > { %v434_v2 = vsel %vm433_vm7, %v1348_v41, %v1367_v45  ;;  %v435_v7 = vsel %vm433_vm7, %v1367_v45, %v1368_v51 }
 0x118   : > { %v1265_v43 = vpack.c.bf16 %v434_v2, %v544_v35  ;;  %v336_v35 = vsel %vm282_vm8, %v1703_v18, 0.0 }
 0x11b   : > { %v1783_v30 = vpop.permute.xlu0 %1400  ;;  %v1411_v3 = vpop.permute.xlu2 %1410 }
 0x11c   : > { %v1381_v36 = vpop.permute.xlu1 %1380  ;;  %v1402_v55 = vunpack.i.l.bf16 %v1783_v30  ;;  %v1403_v4 = vunpack.i.h.bf16 %v1783_v30  ;;  %v1413_v23 = vunpack.i.h.bf16 %v1411_v3  ;;  %v1412_v24 = vunpack.i.l.bf16 %v1411_v3 }
 0x11d   : > { %v1383_v58 = vunpack.i.h.bf16 %v1381_v36  ;;  %v1382_v59 = vunpack.i.l.bf16 %v1381_v36  ;;  %v546_v36 = vsel %vm471_vm1, %v542_v56, %v545_v40  ;;  %v532_v40 = vsel %vm528_vm9, %v1373_v32, %v1377_v16 }
 0x11e   : > { %v386_v8 = vsel %vm2275_vm10, %v1398_v57, %v1402_v55  ;;  %v387_v34 = vsel %vm2275_vm10, %v1402_v55, %v1403_v4  ;;  %v1275_v44 = vpack.c.bf16 %v435_v7, %v546_v36  ;;  %v576_v32 = vsel %vm471_vm1, %v1811_v46, %v541_v53 }
 0x11f   : > { %v384_v19 = vsel %vm2275_vm10, %v1382_v59, %v1383_v58  ;;  %v385_v29 = vsel %vm2275_vm10, %v1383_v58, %v1397_v62  ;;  %v394_v33 = vsel %vm282_vm8, %v386_v8, 0.0  ;;  %v395_v60 = vsel %vm283_vm11, %v387_v34, 0.0  ;;  %vm1277_vm10 = vmpackc.low %vm293_vm3, %vm1634_vm14 }
 0x120   : > { %v392_v37 = vsel %vm282_vm8, %v384_v19, 0.0  ;;  %v393_v51 = vsel %vm283_vm11, %v385_v29, 0.0  ;;  %v577_v57 = vsel %vm471_vm1, %v532_v40, %v542_v56  ;;  %v337_v36 = vsel %vm283_vm11, %v1700_v17, 0.0 }
 0x121   : > { %v506_v55 = vrot.slane %v392_v37, 4  ;;  %v507_v56 = vrot.slane %v393_v51, 4  ;;  %v1262_v37 = vld [vmem:[%s2269_s1] sm:$0xf] }
 0x123   : > { %v1416_v61 = vpop.permute.xlu0 %1415 }
 0x124   : > { %v1386_v63 = vpop.permute.xlu1 %1385  ;;  %v1418_v0 = vunpack.i.h.bf16 %v1416_v61  ;;  %v1417_v1 = vunpack.i.l.bf16 %v1416_v61 }
 0x125   : > { %v1388_v5 = vunpack.i.h.bf16 %v1386_v63  ;;  %v1387_v6 = vunpack.i.l.bf16 %v1386_v63  ;;  %v1431_v63 = vpop.permute.xlu2 %1430 }
 0x126   : > { %v566_v11 = vsel %vm2277_vm12, %v1393_v47, %v1417_v1  ;;  %v567_v13 = vsel %vm2277_vm12, %v1417_v1, %v1418_v0  ;;  %v510_v0 = vrot.slane %v395_v60, 4  ;;  %v1433_v4 = vunpack.i.h.bf16 %v1431_v63 }
 0x127   : > { %v564_v20 = vsel %vm2277_vm12, %v1387_v6, %v1388_v5  ;;  %v565_v21 = vsel %vm2277_vm12, %v1388_v5, %v1392_v50  ;;  %v508_v50 = vrot.slane %v394_v33, 4  ;;  %v1432_v5 = vunpack.i.l.bf16 %v1431_v63 }
 0x128   : > { %v578_v26 = vsel %vm471_vm1, %v444_v38, %v564_v20  ;;  %v579_v28 = vsel %vm471_vm1, %v445_v52, %v565_v21  ;;  %v1378_v38 = vunpack.i.h.bf16 %v1767_v12  ;;  %v361_v12 = vsel %vm2276_vm13, %v1412_v24, %v1413_v23 }
 0x129   : > { %v590_v30 = vpack.c.bf16 %v566_v11, %v578_v26  ;;  %v591_v31 = vpack.c.bf16 %v567_v13, %v579_v28  ;;  %v369_v62 = vsel %vm292_vm4, %v361_v12, 0.0  ;;  %v509_v1 = vsel %vm471_vm1, %v506_v55, %v508_v50 }
 0x12a   : > { %v574_v2 = vsel %vm471_vm1, %v369_v62, %v506_v55  ;;  %v511_v13 = vsel %vm471_vm1, %v507_v56, %v510_v0 }
 0x12b   : > { %622 = vmatpush.bf16.msra.mxu0 %v590_v30  ;;  %636 = vmatpush.bf16.msra.mxu1 %v591_v31  ;;  %v1421_v39 = vpop.permute.xlu0 %1420  ;;  %v584_v11 = vpack.c.bf16 %v509_v1, %v574_v2 }
 0x12c   : > { %v1406_v45 = vpop.permute.xlu1 %1405  ;;  %v1422_v47 = vunpack.i.l.bf16 %v1421_v39  ;;  %v1423_v14 = vunpack.i.h.bf16 %v1421_v39 }
 0x12d   : > { %v1408_v52 = vunpack.i.h.bf16 %v1406_v45  ;;  %v1407_v54 = vunpack.i.l.bf16 %v1406_v45 }
 0x12e   : > { %v362_v58 = vsel %vm2276_vm13, %v1413_v23, %v1422_v47 }
 0x12f   : > { %1266 = vmatpush.bf16.msk.msra.mxu0 %vm1854_vm15, %v1265_v43  ;;  %1276 = vmatpush.bf16.msk.msra.mxu1 %vm1274_vm5, %v1275_v44  ;;  %v529_v59 = vsel %vm528_vm9, %v1378_v38, %v1407_v54  ;;  %v530_v61 = vsel %vm528_vm9, %v1407_v54, %v1408_v52  ;;  %v370_v42 = vsel %vm293_vm3, %v362_v58, 0.0  ;;  %vm493_vm15 = vcmask 1022976   ;;  %vm1267_vm5 = vmpackc.low %vm292_vm4, %vm1634_vm14  ;;  %v1294_v38 = vld [vmem:[%s2269_s1] sm:$0x30] }
 0x130   : > { %v586_v46 = vpack.c.bf16 %v576_v32, %v529_v59  ;;  %v587_v53 = vpack.c.bf16 %v577_v57, %v530_v61  ;;  %v575_v3 = vsel %vm471_vm1, %v370_v42, %v507_v56  ;;  %v496_v22 = vsel %vm493_vm15, %v1432_v5, %v1433_v4 }
 0x131   : > { %v585_v19 = vpack.c.bf16 %v511_v13, %v575_v3  ;;  %v1263_v43 = vor.u32 %v1294_v38, %v1262_v37 }
 0x133   : > { %624 = vmatpush.bf16.msra.mxu0 %v586_v46  ;;  %638 = vmatpush.bf16.msra.mxu1 %v587_v53  ;;  %v1436_v6 = vpop.permute.xlu0 %1435 }
 0x134   : > { %v1426_v7 = vpop.permute.xlu1 %1425  ;;  %v1437_v8 = vunpack.i.l.bf16 %v1436_v6  ;;  %v1438_v29 = vunpack.i.h.bf16 %v1436_v6 }
 0x135   : > { %v1428_v15 = vunpack.i.h.bf16 %v1426_v7  ;;  %v1427_v16 = vunpack.i.l.bf16 %v1426_v7 }
 0x136   : > { %v497_v20 = vsel %vm493_vm15, %v1433_v4, %v1437_v8 }
 0x137   : > { %625 = vmatpush.bf16.msra.mxu0 %v584_v11  ;;  %639 = vmatpush.bf16.msra.mxu1 %v585_v19  ;;  %v359_v21 = vsel %vm2276_vm13, %v1423_v14, %v1427_v16  ;;  %v360_v23 = vsel %vm2276_vm13, %v1427_v16, %v1428_v15  ;;  %vm1270_vm13 = vmpackc.low %vm1634_vm14, %vm282_vm8 }
 0x138   : > { %v1268_v24 = vpack.c.bf16 %v359_v21, %v496_v22  ;;  %v1278_v26 = vpack.c.bf16 %v360_v23, %v497_v20 }
 0x13b   : > { %1269 = vmatpush.bf16.msk.msra.mxu0 %vm1267_vm5, %v1268_v24  ;;  %1279 = vmatpush.bf16.msk.msra.mxu1 %vm1277_vm10, %v1278_v26  ;;  %vm1280_vm10 = vmpackc.low %vm1634_vm14, %vm283_vm11  ;;  %vm609_vm5 = vcmask 883712   ;;  %v298_v24 = vld [vmem:[%s2273_s5 + $0x10] sm:$0xff]  ;;  %vm2280_vm14 = vcmask 654336  }
 0x13c   : > { %v1441_v28 = vpop.permute.xlu1 %1440 }
 0x13d   : > { %v1443_v30 = vunpack.i.h.bf16 %v1441_v28  ;;  %v1442_v31 = vunpack.i.l.bf16 %v1441_v28 }
 0x13f   : > { %v494_v33 = vsel %vm493_vm15, %v1438_v29, %v1442_v31  ;;  %v495_v34 = vsel %vm493_vm15, %v1442_v31, %v1443_v30 }
 0x140   : > { %v572_v39 = vsel %vm471_vm1, %v336_v35, %v494_v33  ;;  %v573_v18 = vsel %vm471_vm1, %v337_v36, %v495_v34 }
 0x141   : > { %v1271_v41 = vpack.c.bf16 %v572_v39, %v1692_v10  ;;  %v1281_v17 = vpack.c.bf16 %v573_v18, %v1689_v9 }
 0x143   : > { %1272 = vmatpush.bf16.msk.msra.mxu0 %vm1270_vm13, %v1271_v41  ;;  %1282 = vmatpush.bf16.msk.msra.mxu1 %vm1280_vm10, %v1281_v17  ;;  %vm796_vm13 = vcmask 1041408   ;;  %vm2281_vm10 = vcmask 998400  }
 0x146   : > { %1273 = vmatmul.msk.bf16.vlgmr.msra.gmra.mxu0 %vm609_vm5, %v1263_v43  ;;  %1283 = vmatmul.msk.bf16.vlgmr.msra.gmra.mxu1 %vm609_vm5, %v1263_v43  ;;  %vm792_vm5 = vcmask 293888  }
 0x170   : > { %v597_v44 = vpop.permute.xlu2 %596 }
 0x182   : > { %v1931_v52 = vpop.permute.xlu0 %601 }
 0x1c3   : > { %v629_v40 = vpop.f32.mrf.mxu0  ;;  %v643_v45 = vpop.f32.mrf.mxu1 }
 0x1c4   : > { %v1921_v47 = vadd.f32 %v629_v40, %v597_v44  ;;  %v1923_v12 = vadd.f32 %v643_v45, %v597_v44 }
 0x1c6   : > { %v648_v50 = vmax.f32 %v1921_v47, 0.0  ;;  %v649_v51 = vmax.f32 %v1923_v12, 0.0 }
 0x1c8   : > { %v655_v9 = vrot.slane %v648_v50, 4  ;;  %v656_v10 = vrot.slane %v649_v51, 4 }
 0x1ca   : > { %v1446_v54 = vpack.i.bf16 %v656_v10, %v655_v9 }
 0x1cb   : > { %v631_v55 = vpop.f32.mrf.mxu0  ;;  %v645_v60 = vpop.f32.mrf.mxu1 }
 0x1cc   : > { %v632_v32 = vadd.f32 %v631_v55, %v1931_v52  ;;  %v646_v57 = vadd.f32 %v645_v60, %v1931_v52  ;;  %1447 = vrot.lane.b32.xlu1 %v1446_v54, %s1624_s27 }
 0x1ce   : > { %v650_v58 = vmax.f32 %v632_v32, 0.0  ;;  %v651_v59 = vmax.f32 %v646_v57, 0.0 }
 0x1d0   : > { %v1451_v61 = vpack.i.bf16 %v651_v59, %v650_v58 }
 0x1d2   : > { %1452 = vrot.lane.b32.xlu2 %v1451_v61, %s1624_s27 }
 0x22c   : > { %v1453_v2 = vpop.permute.xlu2 %1452 }
 0x22d   : > { %v1454_v4 = vunpack.i.l.bf16 %v1453_v2  ;;  %v1455_v11 = vunpack.i.h.bf16 %v1453_v2 }
 0x22f   : > { %v1955_v6 = vsel %vm317_vm0, 0.0, %v1454_v4  ;;  %v843_v13 = vsel %vm317_vm0, %v1455_v11, 0.0  ;;  %v1969_v14 = vsel %vm317_vm0, %v1454_v4, %v1455_v11 }
 0x230   : > { %v908_v15 = vrot.slane %v1955_v6, 4  ;;  %v1526_v16 = vpack.i.bf16 %v843_v13, %v1969_v14  ;;  %v909_v20 = vrot.slane %v1969_v14, 4  ;;  %v910_v21 = vrot.slane %v843_v13, 4 }
 0x232   : > { %v1561_v22 = vpack.i.bf16 %v910_v21, %v909_v20  ;;  %v1566_v23 = vpack.i.bf16 %v909_v20, %v908_v15 }
 0x23e   : > { %v1448_v62 = vpop.permute.xlu1 %1447 }
 0x23f   : > { %v1450_v42 = vunpack.i.h.bf16 %v1448_v62  ;;  %v1449_v63 = vunpack.i.l.bf16 %v1448_v62 }
 0x241   : > { %v1938_v46 = vsel %vm317_vm0, %v1449_v63, %v1450_v42  ;;  %v1941_v53 = vsel %vm317_vm0, 0.0, %v1449_v63  ;;  %v666_v5 = vsel %vm317_vm0, %v1450_v42, 0.0 }
 0x242   : > { %v1466_v56 = vpack.i.bf16 %v1938_v46, %v1941_v53  ;;  %v731_v0 = vrot.slane %v1941_v53, 4  ;;  %v732_v1 = vrot.slane %v1938_v46, 4  ;;  %v1496_v7 = vpack.i.bf16 %v1955_v6, %v666_v5 }
 0x243   : > { %v733_v8 = vrot.slane %v666_v5, 4 }
 0x244   : > { %1467 = vrot.lane.b32.xlu2 %v1466_v56, %s1626_s29  ;;  %1462 = vrot.lane.b32.xlu0 %v1466_v56, %s1627_s30  ;;  %v1486_v3 = vpack.i.bf16 %v732_v1, %v731_v0 }
 0x245   : > { %1457 = vrot.lane.b32.xlu1 %v1466_v56, %s1625_s28  ;;  %v1536_v19 = vpack.i.bf16 %v908_v15, %v733_v8 }
 0x24c   : > { %1477 = vrot.lane.b32.xlu2 %v1466_v56, %s1629_s8  ;;  %1487 = vrot.lane.b32.xlu0 %v1486_v3, %s1630_s9 }
 0x24d   : > { %1472 = vrot.lane.b32.xlu1 %v1466_v56, %s1628_s7 }
 0x254   : > { %1497 = vrot.lane.b32.xlu2 %v1496_v7, %s1625_s28  ;;  %1492 = vrot.lane.b32.xlu0 %v1486_v3, %s1632_s11 }
 0x255   : > { %1482 = vrot.lane.b32.xlu1 %v1466_v56, %s1631_s10 }
 0x25c   : > { %1512 = vrot.lane.b32.xlu2 %v1496_v7, %s1628_s7  ;;  %1507 = vrot.lane.b32.xlu0 %v1496_v7, %s1626_s29 }
 0x25d   : > { %738 = vrot.lane.b32.xlu1 %v733_v8, %s1632_s11 }
 0x264   : > { %1522 = vrot.lane.b32.xlu2 %v1496_v7, %s1631_s10  ;;  %1517 = vrot.lane.b32.xlu0 %v1496_v7, %s1629_s8 }
 0x265   : > { %1502 = vrot.lane.b32.xlu1 %v1496_v7, %s1627_s30 }
 0x26c   : > { %1527 = vrot.lane.b32.xlu2 %v1526_v16, %s1625_s28  ;;  %1532 = vrot.lane.b32.xlu0 %v1526_v16, %s1627_s30 }
 0x26d   : > { %1537 = vrot.lane.b32.xlu1 %v1536_v19, %s1630_s9 }
 0x274   : > { %1547 = vrot.lane.b32.xlu2 %v1526_v16, %s1628_s7  ;;  %1562 = vrot.lane.b32.xlu0 %v1561_v22, %s1630_s9 }
 0x275   : > { %1542 = vrot.lane.b32.xlu1 %v1526_v16, %s1626_s29 }
 0x27c   : > { %1557 = vrot.lane.b32.xlu2 %v1526_v16, %s1631_s10  ;;  %1567 = vrot.lane.b32.xlu0 %v1566_v23, %s1632_s11 }
 0x27d   : > { %1552 = vrot.lane.b32.xlu1 %v1526_v16, %s1629_s8 }
 0x284   : > { %969 = vperm.xlu2 %1444, %v298_v24  }
 0x285   : > { %915 = vrot.lane.b32.xlu1 %v910_v21, %s1632_s11 }
 0x29e   : > { %v1987_v26 = vpop.permute.xlu2 %1467 }
 0x29f   : > { %v1470_v39 = vunpack.i.h.bf16 %v1987_v26  ;;  %v1469_v18 = vunpack.i.l.bf16 %v1987_v26 }
 0x2a1   : > { %v713_v57 = vsel %vm433_vm7, %v1469_v18, %v1470_v39 }
 0x2a2   : > { %v717_v0 = vsel %vm282_vm8, %v713_v57, 0.0 }
 0x2a6   : > { %v1989_v28 = vpop.permute.xlu2 %1477 }
 0x2a7   : > { %v1480_v58 = vunpack.i.h.bf16 %v1989_v28  ;;  %v1479_v59 = vunpack.i.l.bf16 %v1989_v28  ;;  %v667_v28 = vsel %vm282_vm8, %v1941_v53, 0.0 }
 0x2a9   : > { %v689_v5 = vsel %vm2280_vm14, %v1479_v59, %v1480_v58 }
 0x2aa   : > { %v693_v15 = vsel %vm282_vm8, %v689_v5, 0.0 }
 0x2ae   : > { %v1498_v29 = vpop.permute.xlu2 %1497 }
 0x2af   : > { %v1499_v36 = vunpack.i.l.bf16 %v1498_v29  ;;  %v1500_v16 = vunpack.i.h.bf16 %v1498_v29 }
 0x2b6   : > { %v1991_v30 = vpop.permute.xlu2 %1512  ;;  %v1993_v31 = vpop.permute.xlu0 %1462 }
 0x2b7   : > { %v1465_v33 = vunpack.i.h.bf16 %v1993_v31  ;;  %v1464_v34 = vunpack.i.l.bf16 %v1993_v31  ;;  %v1458_v35 = vpop.permute.xlu1 %1457 }
 0x2b8   : > { %v1460_v37 = vunpack.i.h.bf16 %v1458_v35  ;;  %v1459_v38 = vunpack.i.l.bf16 %v1458_v35 }
 0x2b9   : > { %v701_v43 = vsel %vm408_vm6, %v1464_v34, %v1465_v33 }
 0x2ba   : > { %v725_v41 = vsel %vm458_vm2, %v1459_v38, %v1460_v37  ;;  %v726_v17 = vsel %vm458_vm2, %v1460_v37, %v1499_v36  ;;  %v705_v32 = vsel %vm292_vm4, %v701_v43, 0.0  ;;  %v746_v37 = vrot.slane %v693_v15, 4 }
 0x2bb   : > { %v729_v44 = vsel %vm292_vm4, %v725_v41, 0.0  ;;  %v730_v40 = vsel %vm293_vm3, %v726_v17, 0.0  ;;  %v762_v1 = vrot.slane %v705_v32, 4 }
 0x2bc   : > { %v788_v45 = vpack.c.bf16 %v729_v44, %v729_v44  ;;  %v789_v9 = vpack.c.bf16 %v730_v40, %v730_v40 }
 0x2be   : > { %v2008_v10 = vpop.permute.xlu2 %1522  ;;  %v798_v54 = vsel %vm796_vm13, %v788_v45, 0  ;;  %v801_v55 = vsel %vm796_vm13, %v789_v9, 0  ;;  %v2012_v60 = vpop.permute.xlu0 %1487  ;;  %v2058_v45 = vld [vmem:[%s2270_s2] sm:$0x3] }
 0x2bf   : > { %v2021_v61 = vpop.permute.xlu1 %1472  ;;  %808 = vmatpush.bf16.msra.mxu2 %v798_v54  ;;  %821 = vmatpush.bf16.msra.mxu3 %v801_v55  ;;  %v1490_v62 = vunpack.i.h.bf16 %v2012_v60  ;;  %v1489_v42 = vunpack.i.l.bf16 %v2012_v60 }
 0x2c0   : > { %v1475_v63 = vunpack.i.h.bf16 %v2021_v61  ;;  %v1474_v56 = vunpack.i.l.bf16 %v2021_v61 }
 0x2c1   : > { %v772_v2 = vsel %vm2277_vm12, %v1489_v42, %v1490_v62 }
 0x2c2   : > { %v756_v3 = vsel %vm528_vm9, %v1474_v56, %v1475_v63  ;;  %v782_v4 = vsel %vm471_vm1, %v717_v0, %v772_v2  ;;  %v1514_v2 = vunpack.i.l.bf16 %v1991_v30 }
 0x2c3   : > { %v780_v7 = vsel %vm471_vm1, %v756_v3, %v762_v1  ;;  %v1524_v3 = vunpack.i.l.bf16 %v2008_v10 }
 0x2c4   : > { %v786_v8 = vpack.c.bf16 %v782_v4, %v780_v7 }
 0x2c6   : > { %809 = vmatpush.bf16.msra.mxu2 %v786_v8  ;;  %v1528_v11 = vpop.permute.xlu2 %1527  ;;  %v1493_v13 = vpop.permute.xlu0 %1492 }
 0x2c7   : > { %v1529_v19 = vunpack.i.l.bf16 %v1528_v11  ;;  %v1483_v20 = vpop.permute.xlu1 %1482  ;;  %v1495_v21 = vunpack.i.h.bf16 %v1493_v13  ;;  %v1494_v22 = vunpack.i.l.bf16 %v1493_v13  ;;  %v1530_v57 = vunpack.i.h.bf16 %v1528_v11 }
 0x2c8   : > { %v1485_v23 = vunpack.i.h.bf16 %v1483_v20  ;;  %v1484_v24 = vunpack.i.l.bf16 %v1483_v20 }
 0x2c9   : > { %v740_v34 = vsel %vm493_vm15, %v1494_v22, %v1495_v21  ;;  %v902_v35 = vsel %vm458_vm2, %v1500_v16, %v1529_v19  ;;  %v903_v5 = vsel %vm458_vm2, %v1529_v19, %v1530_v57  ;;  %v757_v22 = vsel %vm528_vm9, %v1475_v63, %v1514_v2 }
 0x2ca   : > { %v677_v36 = vsel %vm2281_vm10, %v1484_v24, %v1485_v23  ;;  %v776_v38 = vsel %vm471_vm1, %v667_v28, %v740_v34  ;;  %v906_v29 = vsel %vm292_vm4, %v902_v35, 0.0  ;;  %v678_v15 = vsel %vm2281_vm10, %v1485_v23, %v1524_v3  ;;  %vm2282_vm10 = vmmov %vm2280_vm14 }
 0x2cb   : > { %v681_v18 = vsel %vm292_vm4, %v677_v36, 0.0  ;;  %v965_v41 = vpack.c.bf16 %v906_v29, %v906_v29  ;;  %v907_v19 = vsel %vm293_vm3, %v903_v5, 0.0  ;;  %v682_v34 = vsel %vm293_vm3, %v678_v15, 0.0 }
 0x2cc   : > { %v778_v17 = vsel %vm471_vm1, %v681_v18, %v746_v37  ;;  %v668_v37 = vsel %vm283_vm11, %v1938_v46, 0.0 }
 0x2cd   : > { %v784_v43 = vpack.c.bf16 %v778_v17, %v776_v38  ;;  %v976_v53 = vsel %vm796_vm13, %v965_v41, 0  ;;  %v966_v38 = vpack.c.bf16 %v907_v19, %v907_v19 }
 0x2ce   : > { %v2053_v44 = vpop.permute.xlu0 %1507  ;;  %v1548_v20 = vpop.permute.xlu2 %1547 }
 0x2cf   : > { %v739_v40 = vpop.permute.xlu1 %738  ;;  %810 = vmatpush.bf16.msra.mxu2 %v784_v43  ;;  %v1509_v56 = vunpack.i.l.bf16 %v2053_v44  ;;  %v1549_v29 = vunpack.i.l.bf16 %v1548_v20  ;;  %v1510_v18 = vunpack.i.h.bf16 %v2053_v44  ;;  %v979_v44 = vsel %vm796_vm13, %v966_v38, 0 }
 0x2d0   : > { %v741_v28 = vsel %vm493_vm15, %v1495_v21, %v739_v40  ;;  %v1550_v21 = vunpack.i.h.bf16 %v1548_v20 }
 0x2d1   : > { %v777_v17 = vsel %vm471_vm1, %v668_v37, %v741_v28 }
 0x2d2   : > { %1284 = vmatmul.msk.bf16.vlgmr.msra.gmra.mxu2 %vm792_vm5, %v2058_v45 }
 0x2d3   : > { %986 = vmatpush.bf16.msrb.mxu2 %v976_v53 }
 0x2d6   : > { %v2062_v9 = vpop.permute.xlu0 %1517  ;;  %v1558_v3 = vpop.permute.xlu2 %1557 }
 0x2d7   : > { %v1503_v54 = vpop.permute.xlu1 %1502  ;;  %v1519_v55 = vunpack.i.l.bf16 %v2062_v9  ;;  %v1559_v15 = vunpack.i.l.bf16 %v1558_v3  ;;  %v1560_v28 = vunpack.i.h.bf16 %v1558_v3 }
 0x2d8   : > { %v1504_v32 = vunpack.i.l.bf16 %v1503_v54  ;;  %v1505_v11 = vunpack.i.h.bf16 %v1503_v54 }
 0x2d9   : > { %v690_v42 = vsel %vm2280_vm14, %v1480_v58, %v1519_v55  ;;  %v714_v58 = vsel %vm433_vm7, %v1470_v39, %v1509_v56 }
 0x2da   : > { %v702_v59 = vsel %vm408_vm6, %v1465_v33, %v1504_v32  ;;  %v694_v1 = vsel %vm283_vm11, %v690_v42, 0.0  ;;  %v718_v39 = vsel %vm283_vm11, %v714_v58, 0.0  ;;  %v1515_v42 = vunpack.i.h.bf16 %v1991_v30 }
 0x2db   : > { %v706_v0 = vsel %vm293_vm3, %v702_v59, 0.0  ;;  %v747_v16 = vrot.slane %v694_v1, 4 }
 0x2dc   : > { %v763_v8 = vrot.slane %v706_v0, 4  ;;  %v933_v5 = vsel %vm528_vm9, %v1515_v42, %v1549_v29 }
 0x2dd   : > { %v779_v36 = vsel %vm471_vm1, %v682_v34, %v747_v16 }
 0x2de   : > { %v1533_v4 = vpop.permute.xlu0 %1532  ;;  %v781_v61 = vsel %vm471_vm1, %v757_v22, %v763_v8  ;;  %v785_v46 = vpack.c.bf16 %v779_v36, %v777_v17  ;;  %v845_v17 = vsel %vm283_vm11, %v1969_v14, 0.0  ;;  %v790_v14 = vrot.slane %v1931_v52, 4 }
 0x2df   : > { %v1538_v31 = vpop.permute.xlu1 %1537  ;;  %v1535_v7 = vunpack.i.h.bf16 %v1533_v4  ;;  %v1534_v33 = vunpack.i.l.bf16 %v1533_v4 }
 0x2e0   : > { %v1539_v13 = vunpack.i.l.bf16 %v1538_v31  ;;  %v1540_v43 = vunpack.i.h.bf16 %v1538_v31  ;;  %v934_v31 = vsel %vm528_vm9, %v1549_v29, %v1550_v21 }
 0x2e1   : > { %v878_v24 = vsel %vm408_vm6, %v1505_v11, %v1534_v33  ;;  %v879_v26 = vsel %vm408_vm6, %v1534_v33, %v1535_v7 }
 0x2e2   : > { %v773_v23 = vsel %vm2277_vm12, %v1490_v62, %v1539_v13  ;;  %v882_v60 = vsel %vm292_vm4, %v878_v24, 0.0  ;;  %v883_v62 = vsel %vm293_vm3, %v879_v26, 0.0  ;;  %v1525_v24 = vunpack.i.h.bf16 %v2008_v10 }
 0x2e3   : > { %v783_v63 = vsel %vm471_vm1, %v718_v39, %v773_v23  ;;  %v939_v57 = vrot.slane %v882_v60, 4  ;;  %v940_v59 = vrot.slane %v883_v62, 4  ;;  %v1520_v26 = vunpack.i.h.bf16 %v2062_v9 }
 0x2e4   : > { %v787_v35 = vpack.c.bf16 %v783_v63, %v781_v61  ;;  %v844_v9 = vsel %vm282_vm8, %v1955_v6, 0.0 }
 0x2e5   : > { %v957_v7 = vsel %vm471_vm1, %v933_v5, %v939_v57  ;;  %v958_v58 = vsel %vm471_vm1, %v934_v31, %v940_v59 }
 0x2e6   : > { %822 = vmatpush.bf16.msra.mxu3 %v787_v35  ;;  %v1563_v41 = vpop.permute.xlu0 %1562 }
 0x2e7   : > { %v1543_v53 = vpop.permute.xlu1 %1542  ;;  %v1565_v40 = vunpack.i.h.bf16 %v1563_v41  ;;  %v1564_v54 = vunpack.i.l.bf16 %v1563_v41 }
 0x2e8   : > { %v1545_v55 = vunpack.i.h.bf16 %v1543_v53  ;;  %v1544_v32 = vunpack.i.l.bf16 %v1543_v53 }
 0x2e9   : > { %v949_v56 = vsel %vm2277_vm12, %v1540_v43, %v1564_v54  ;;  %v950_v0 = vsel %vm2277_vm12, %v1564_v54, %v1565_v40  ;;  %vm2283_vm12 = vcmask 998400   ;;  %v831_v43 = vld [vmem:[%s2271_s3] sm:$0x3] }
 0x2ea   : > { %823 = vmatpush.bf16.msra.mxu3 %v785_v46  ;;  %v890_v1 = vsel %vm433_vm7, %v1510_v18, %v1544_v32  ;;  %v891_v2 = vsel %vm433_vm7, %v1544_v32, %v1545_v55  ;;  %v854_v63 = vsel %vm2283_vm12, %v1525_v24, %v1559_v15 }
 0x2eb   : > { %v894_v4 = vsel %vm282_vm8, %v890_v1, 0.0  ;;  %v895_v30 = vsel %vm283_vm11, %v891_v2, 0.0  ;;  %v858_v37 = vsel %vm292_vm4, %v854_v63, 0.0 }
 0x2ec   : > { %v959_v33 = vsel %vm471_vm1, %v894_v4, %v949_v56  ;;  %v960_v8 = vsel %vm471_vm1, %v895_v30, %v950_v0  ;;  %v2173_v4 = vpop.permute.xlu2 %969 }
 0x2ed   : > { %1285 = vmatmul.msk.bf16.vlgmr.msra.gmra.mxu3 %vm792_vm5, %v2058_v45  ;;  %v963_v11 = vpack.c.bf16 %v959_v33, %v957_v7  ;;  %v964_v13 = vpack.c.bf16 %v960_v8, %v958_v58  ;;  %v1145_v48 = vrot.slane %v2173_v4, 4 }
 0x2ee   : > { %999 = vmatpush.bf16.msrb.mxu3 %v979_v44  ;;  %v1568_v16 = vpop.permute.xlu0 %1567 }
 0x2ef   : > { %v1553_v20 = vpop.permute.xlu1 %1552  ;;  %v1570_v22 = vunpack.i.h.bf16 %v1568_v16  ;;  %v1569_v19 = vunpack.i.l.bf16 %v1568_v16  ;;  %987 = vmatpush.bf16.msrb.mxu2 %v963_v11 }
 0x2f0   : > { %v1555_v39 = vunpack.i.h.bf16 %v1553_v20  ;;  %v1554_v23 = vunpack.i.l.bf16 %v1553_v20 }
 0x2f1   : > { %v917_v35 = vsel %vm493_vm15, %v1569_v19, %v1570_v22 }
 0x2f2   : > { %1000 = vmatpush.bf16.msrb.mxu3 %v964_v13  ;;  %v866_v61 = vsel %vm2280_vm14, %v1520_v26, %v1554_v23  ;;  %v867_v45 = vsel %vm2282_vm10, %v1554_v23, %v1555_v39  ;;  %vm2284_vm14 = vmmov %vm2283_vm12  ;;  %v953_v62 = vsel %vm471_vm1, %v844_v9, %v917_v35 }
 0x2f3   : > { %v870_v34 = vsel %vm282_vm8, %v866_v61, 0.0  ;;  %v871_v36 = vsel %vm283_vm11, %v867_v45, 0.0  ;;  %v855_v38 = vsel %vm2284_vm14, %v1559_v15, %v1560_v28 }
 0x2f4   : > { %v923_v10 = vrot.slane %v870_v34, 4  ;;  %v924_v60 = vrot.slane %v871_v36, 4  ;;  %v859_v6 = vsel %vm293_vm3, %v855_v38, 0.0 }
 0x2f6   : > { %v955_v21 = vsel %vm471_vm1, %v858_v37, %v923_v10  ;;  %v956_v40 = vsel %vm471_vm1, %v859_v6, %v924_v60 }
 0x2f7   : > { %v916_v29 = vpop.permute.xlu1 %915  ;;  %v961_v18 = vpack.c.bf16 %v955_v21, %v953_v62 }
 0x2f8   : > { %v918_v41 = vsel %vm493_vm15, %v1570_v22, %v916_v29 }
 0x2f9   : > { %988 = vmatpush.bf16.msrb.mxu2 %v961_v18  ;;  %v954_v53 = vsel %vm471_vm1, %v845_v17, %v918_v41 }
 0x2fa   : > { %v962_v54 = vpack.c.bf16 %v956_v40, %v954_v53 }
 0x2fc   : > { %1286 = vmatmul.msk.bf16.vlgmr.msrb.gmra.mxu2 %vm792_vm5, %v831_v43  ;;  %1001 = vmatpush.bf16.msrb.mxu3 %v962_v54 }
 0x2ff   : > { %1287 = vmatmul.msk.bf16.vlgmr.msrb.gmra.mxu3 %vm792_vm5, %v831_v43 }
 0x355   : > { %v812_v46 = vpop.f32.mrf.mxu2 }
 0x356   : > { %v813_v55 = vadd.f32 %v812_v46, %v790_v14 }
 0x358   : > { %v829_v32 = vmax.f32 %v813_v55, 0.0 }
 0x35a   : > { %v1186_v57 = vrot.slane %v829_v32, 4 }
 0x35c   : > { %v1190_v59 = vsel %vm471_vm1, %v648_v50, %v1186_v57 }
 0x35d   : > { %1192 = vst [vmem:[%s2163_s16] sm:$0xff] %v1190_v59  ;;  %v814_v42 = vpop.f32.mrf.mxu2 }
 0x370   : > { %v825_v56 = vpop.f32.mrf.mxu3 }
 0x371   : > { %v826_v52 = vadd.f32 %v825_v56, %v790_v14 }
 0x373   : > { %v830_v0 = vmax.f32 %v826_v52, 0.0 }
 0x375   : > { %v1187_v44 = vrot.slane %v830_v0, 4 }
 0x377   : > { %v1191_v1 = vsel %vm471_vm1, %v649_v51, %v1187_v44 }
 0x378   : > { %1193 = vst [vmem:[%s2163_s16 + $0x8] sm:$0xff] %v1191_v1  ;;  %v827_v2 = vpop.f32.mrf.mxu3 }
 0x37f   : > { %v990_v3 = vpop.f32.mrf.mxu2 }
 0x380   : > { %v991_v5 = vadd.f32 %v990_v3, %v2173_v4 }
 0x382   : > { %v1003_v47 = vpop.f32.mrf.mxu3  ;;  %v1007_v30 = vmax.f32 %v991_v5, 0.0 }
 0x383   : > { %v1004_v50 = vadd.f32 %v1003_v47, %v2173_v4 }
 0x385   : > { %v1008_v31 = vmax.f32 %v1004_v50, 0.0 }
 0x387   : > { %v1571_v7 = vpack.i.bf16 %v1008_v31, %v1007_v30  ;;  %v992_v33 = vpop.f32.mrf.mxu2 }
 0x389   : > { %1572 = vrot.lane.b32.xlu0 %v1571_v7, %s1624_s27 }
 0x38a   : > { %v1005_v58 = vpop.f32.mrf.mxu3 }
 0x3fb   : > { %v1573_v12 = vpop.permute.xlu0 %1572 }
 0x3fc   : > { %v1575_v8 = vunpack.i.h.bf16 %v1573_v12  ;;  %v1574_v51 = vunpack.i.l.bf16 %v1573_v12 }
 0x3fe   : > { %v1021_v11 = vsel %vm317_vm0, %v1575_v8, 0.0  ;;  %v2180_v13 = vsel %vm317_vm0, %v1574_v51, %v1575_v8  ;;  %v2183_v15 = vsel %vm317_vm0, 0.0, %v1574_v51  ;;  %vm2285_vm0 = vcmask 236544  }
 0x3ff   : > { %1078 = vrot.lane.b32.xlu2 %v1021_v11, %s1625_s28  ;;  %v1581_v16 = vpack.i.bf16 %v2180_v13, %v2183_v15  ;;  %v1086_v20 = vrot.slane %v2183_v15, 4  ;;  %v1087_v22 = vrot.slane %v2180_v13, 4  ;;  %v1088_v24 = vrot.slane %v1021_v11, 4 }
 0x401   : > { %1582 = vrot.lane.b32.xlu0 %v1581_v16, %s1627_s30  ;;  %1577 = vrot.lane.b32.xlu1 %v1581_v16, %s1625_s28  ;;  %v1606_v19 = vpack.i.bf16 %v1087_v22, %v1086_v20 }
 0x407   : > { %1587 = vrot.lane.b32.xlu2 %v1581_v16, %s1626_s29 }
 0x409   : > { %1066 = vrot.lane.b32.xlu0 %v1021_v11, %s1626_s29  ;;  %1054 = vrot.lane.b32.xlu1 %v1021_v11, %s1627_s30 }
 0x40f   : > { %1109 = vrot.lane.b32.xlu2 %v1021_v11, %s1628_s7 }
 0x411   : > { %1042 = vrot.lane.b32.xlu0 %v1021_v11, %s1629_s8  ;;  %1592 = vrot.lane.b32.xlu1 %v1581_v16, %s1628_s7 }
 0x417   : > { %1597 = vrot.lane.b32.xlu2 %v1581_v16, %s1629_s8 }
 0x419   : > { %1602 = vrot.lane.b32.xlu1 %v1581_v16, %s1631_s10  ;;  %1607 = vrot.lane.b32.xlu0 %v1606_v19, %s1630_s9 }
 0x41f   : > { %1030 = vrot.lane.b32.xlu2 %v1021_v11, %s1631_s10 }
 0x421   : > { %1125 = vrot.lane.b32.xlu1 %v1088_v24, %s1630_s9  ;;  %1612 = vrot.lane.b32.xlu0 %v1606_v19, %s1632_s11 }
 0x429   : > { %1093 = vrot.lane.b32.xlu1 %v1088_v24, %s1632_s11 }
 0x459   : > { %v1079_v26 = vpop.permute.xlu2 %1078 }
 0x461   : > { %v1588_v28 = vpop.permute.xlu2 %1587 }
 0x462   : > { %v1590_v6 = vunpack.i.h.bf16 %v1588_v28  ;;  %v1589_v43 = vunpack.i.l.bf16 %v1588_v28 }
 0x464   : > { %v1068_v42 = vsel %vm433_vm7, %v1589_v43, %v1590_v6 }
 0x465   : > { %v1072_v5 = vsel %vm282_vm8, %v1068_v42, 0.0 }
 0x469   : > { %v1110_v21 = vpop.permute.xlu2 %1109 }
 0x471   : > { %v1598_v40 = vpop.permute.xlu2 %1597 }
 0x472   : > { %v1600_v55 = vunpack.i.h.bf16 %v1598_v40  ;;  %v1599_v32 = vunpack.i.l.bf16 %v1598_v40 }
 0x473   : > { %v1583_v39 = vpop.permute.xlu0 %1582  ;;  %v1578_v23 = vpop.permute.xlu1 %1577 }
 0x474   : > { %v1580_v61 = vunpack.i.h.bf16 %v1578_v23  ;;  %v1579_v45 = vunpack.i.l.bf16 %v1578_v23  ;;  %v1585_v29 = vunpack.i.h.bf16 %v1583_v39  ;;  %v1584_v18 = vunpack.i.l.bf16 %v1583_v39 }
 0x476   : > { %v1081_v63 = vsel %vm458_vm2, %v1580_v61, %v1079_v26  ;;  %v1080_v34 = vsel %vm458_vm2, %v1579_v45, %v1580_v61  ;;  %v1056_v53 = vsel %vm408_vm6, %v1584_v18, %v1585_v29  ;;  %vm2286_vm2 = vmmov %vm2282_vm10 }
 0x477   : > { %v1085_v35 = vsel %vm293_vm3, %v1081_v63, 0.0  ;;  %v1084_v36 = vsel %vm292_vm4, %v1080_v34, 0.0  ;;  %v1060_v46 = vsel %vm292_vm4, %v1056_v53, 0.0  ;;  %v1044_v50 = vsel %vm2286_vm2, %v1599_v32, %v1600_v55 }
 0x478   : > { %v1144_v10 = vpack.c.bf16 %v1085_v35, %v1085_v35  ;;  %v1143_v9 = vpack.c.bf16 %v1084_v36, %v1084_v36  ;;  %v1117_v3 = vrot.slane %v1060_v46, 4  ;;  %v1048_v51 = vsel %vm282_vm8, %v1044_v50, 0.0 }
 0x479   : > { %v1101_v45 = vrot.slane %v1048_v51, 4  ;;  %v1031_v63 = vpop.permute.xlu2 %1030  ;;  %v1022_v35 = vsel %vm282_vm8, %v2183_v15, 0.0 }
 0x47a   : > { %v1154_v37 = vsel %vm796_vm13, %v1144_v10, 0  ;;  %v1151_v62 = vsel %vm796_vm13, %v1143_v9, 0 }
 0x47b   : > { %v1067_v38 = vpop.permute.xlu0 %1066  ;;  %v1055_v60 = vpop.permute.xlu1 %1054  ;;  %1174 = vmatpush.bf16.msrb.mxu1 %v1154_v37  ;;  %1161 = vmatpush.bf16.msrb.mxu0 %v1151_v62 }
 0x47c   : > { %v1057_v44 = vsel %vm408_vm6, %v1585_v29, %v1055_v60  ;;  %v1069_v7 = vsel %vm433_vm7, %v1590_v6, %v1067_v38  ;;  %vm2287_vm6 = vmmov %vm2283_vm12  ;;  %v1009_v60 = vld [vmem:[%s2272_s4] sm:$0x3]  ;;  %v1023_v29 = vsel %vm283_vm11, %v2180_v13, 0.0 }
 0x47d   : > { %v1061_v33 = vsel %vm293_vm3, %v1057_v44, 0.0  ;;  %v1073_v11 = vsel %vm283_vm11, %v1069_v7, 0.0  ;;  %vm2288_vm12 = vmmov %vm2285_vm0 }
 0x47e   : > { %v1118_v16 = vrot.slane %v1061_v33, 4  ;;  %vm2289_vm7 = vmmov %vm2286_vm2 }
 0x483   : > { %v1043_v41 = vpop.permute.xlu0 %1042  ;;  %v1593_v17 = vpop.permute.xlu1 %1592 }
 0x484   : > { %v1595_v54 = vunpack.i.h.bf16 %v1593_v17  ;;  %v1594_v14 = vunpack.i.l.bf16 %v1593_v17  ;;  %v1045_v23 = vsel %vm2289_vm7, %v1600_v55, %v1043_v41 }
 0x485   : > { %v1049_v37 = vsel %vm283_vm11, %v1045_v23, 0.0 }
 0x486   : > { %v1111_v0 = vsel %vm528_vm9, %v1594_v14, %v1595_v54  ;;  %v1112_v8 = vsel %vm528_vm9, %v1595_v54, %v1110_v21  ;;  %v1102_v15 = vrot.slane %v1049_v37, 4 }
 0x487   : > { %v1135_v30 = vsel %vm471_vm1, %v1111_v0, %v1117_v3  ;;  %v1136_v28 = vsel %vm471_vm1, %v1112_v8, %v1118_v16 }
 0x48b   : > { %v1603_v57 = vpop.permute.xlu1 %1602  ;;  %v1608_v59 = vpop.permute.xlu0 %1607 }
 0x48c   : > { %v1610_v56 = vunpack.i.h.bf16 %v1608_v59  ;;  %v1609_v52 = vunpack.i.l.bf16 %v1608_v59  ;;  %v1605_v1 = vunpack.i.h.bf16 %v1603_v57  ;;  %v1604_v2 = vunpack.i.l.bf16 %v1603_v57 }
 0x48e   : > { %v1127_v47 = vsel %vm2285_vm0, %v1609_v52, %v1610_v56  ;;  %v1032_v12 = vsel %vm2287_vm6, %v1604_v2, %v1605_v1 }
 0x48f   : > { %v1137_v31 = vsel %vm471_vm1, %v1072_v5, %v1127_v47  ;;  %v1036_v39 = vsel %vm292_vm4, %v1032_v12, 0.0  ;;  %vm2290_vm4 = vmmov %vm2287_vm6 }
 0x490   : > { %v1141_v58 = vpack.c.bf16 %v1137_v31, %v1135_v30  ;;  %v1133_v49 = vsel %vm471_vm1, %v1036_v39, %v1101_v45  ;;  %v1033_v9 = vsel %vm2290_vm4, %v1605_v1, %v1031_v63 }
 0x491   : > { %v1037_v25 = vsel %vm293_vm3, %v1033_v9, 0.0 }
 0x492   : > { %1162 = vmatpush.bf16.msrb.mxu0 %v1141_v58  ;;  %v1134_v41 = vsel %vm471_vm1, %v1037_v25, %v1102_v15 }
 0x493   : > { %v1126_v20 = vpop.permute.xlu1 %1125  ;;  %v1613_v22 = vpop.permute.xlu0 %1612 }
 0x494   : > { %v1128_v19 = vsel %vm2288_vm12, %v1610_v56, %v1126_v20  ;;  %v1615_v24 = vunpack.i.h.bf16 %v1613_v22  ;;  %v1614_v26 = vunpack.i.l.bf16 %v1613_v22 }
 0x495   : > { %v1138_v61 = vsel %vm471_vm1, %v1073_v11, %v1128_v19 }
 0x496   : > { %v1142_v34 = vpack.c.bf16 %v1138_v61, %v1136_v28  ;;  %v1095_v36 = vsel %vm493_vm15, %v1614_v26, %v1615_v24 }
 0x497   : > { %v1131_v10 = vsel %vm471_vm1, %v1022_v35, %v1095_v36 }
 0x498   : > { %1175 = vmatpush.bf16.msrb.mxu1 %v1142_v34  ;;  %v1139_v38 = vpack.c.bf16 %v1133_v49, %v1131_v10 }
 0x49a   : > { %1163 = vmatpush.bf16.msrb.mxu0 %v1139_v38 }
 0x49b   : > { %v1094_v62 = vpop.permute.xlu1 %1093 }
 0x49c   : > { %v1096_v21 = vsel %vm493_vm15, %v1615_v24, %v1094_v62 }
 0x49d   : > { %1288 = vmatmul.msk.bf16.vlgmr.msrb.gmra.mxu0 %vm792_vm5, %v1009_v60  ;;  %v1132_v18 = vsel %vm471_vm1, %v1023_v29, %v1096_v21 }
 0x49e   : > { %v1140_v17 = vpack.c.bf16 %v1134_v41, %v1132_v18 }
 0x4a0   : > { %1176 = vmatpush.bf16.msrb.mxu1 %v1140_v17 }
 0x4a3   : > { %1289 = vmatmul.msk.bf16.vlgmr.msrb.gmra.mxu1 %vm792_vm5, %v1009_v60 }
 0x51a   : > { %v1165_v6 = vpop.f32.mrf.mxu0 }
 0x51b   : > { %v1166_v43 = vadd.f32 %v1165_v6, %v1145_v48 }
 0x51d   : > { %v1182_v53 = vmax.f32 %v1166_v43, 0.0 }
 0x51f   : > { %1194 = vst [vmem:[%s2163_s16 + $0x10] sm:$0xf] %v1182_v53 }
 0x520   : > { %v1178_v40 = vpop.f32.mrf.mxu1 }
 0x521   : > { %v1179_v27 = vadd.f32 %v1178_v40, %v1145_v48 }
 0x522   : > { %v1167_v13 = vpop.f32.mrf.mxu0 }
 0x523   : > { %v1183_v54 = vmax.f32 %v1179_v27, 0.0 }
 0x525   : > { %1195 = vst [vmem:[%s2163_s16 + $0x18] sm:$0xf] %v1183_v54 }
 0x528   : > { %v1180_v14 = vpop.f32.mrf.mxu1 }
 0x529 PF: > { %s16_s21 = sadd.s32 1, %s1622_s21  }
 0x52a   : > { %p13_p4 = scmp.ge.s32.totalorder %s16_s21, 4  }
 0x52c   :  { %15 = sbr.rel (!%p13_p4) target bundleno = 1 (0x1), region = 74 }

</bundles_post_ra>
